<compile_context>
chip_gen: v5e
topology: v5e:2x2
jax: 0.10.0
libtpu: 0.0.40
codegen_flags: <defaults>
</compile_context>

<pallas_src>
import functools

import jax
import jax.numpy as jnp
from jax.experimental import pallas as pl
from jax.experimental.pallas import tpu as pltpu

N_OUT_PAD = 128                    # lane-dense padded width for the final layer
VMEM_LIMIT_BYTES = 48 * 1024 * 1024


def _act_dtype():
    """bf16 sigmoids on chips with a bf16 VPU/EUP (v6e / v7x); f32 otherwise (v5e etc.)."""
    try:
        kind = jax.devices()[0].device_kind.lower()
    except Exception:
        kind = ""
    if ("v6" in kind) or ("v7" in kind) or ("7x" in kind):
        return jnp.bfloat16
    return jnp.float32


def _sigmoid(x, dtype):
    # Single-EUP-op sigmoid: 0.5*tanh(0.5*x)+0.5 (one tanh + cheap VPU mul/add).
    x = x.astype(dtype)
    return 0.5 * jnp.tanh(0.5 * x) + 0.5


def mlp_kernel(x_ref, w1_ref, b1_ref, w2_ref, b2_ref, w3_ref, b3_ref, o_ref, *, act_dtype):
    """Fused 3-layer MLP: sigmoid(x@W1+b1) -> sigmoid(.@W2+b2) -> .@W3+b3."""
    # In-kernel f32 -> bf16 cast of the input (VPU work hidden under the MXU).
    x = x_ref[...].astype(jnp.bfloat16)
    h1 = jnp.dot(x, w1_ref[...], preferred_element_type=jnp.float32) + b1_ref[...]
    h1 = _sigmoid(h1, act_dtype).astype(jnp.bfloat16)
    h2 = jnp.dot(h1, w2_ref[...], preferred_element_type=jnp.float32) + b2_ref[...]
    h2 = _sigmoid(h2, act_dtype).astype(jnp.bfloat16)
    logits = jnp.dot(h2, w3_ref[...], preferred_element_type=jnp.float32) + b3_ref[...]
    o_ref[...] = logits.astype(o_ref.dtype)


def _cost_estimate(b, n_in):
    flops = 2 * b * (n_in * 256 + 256 * 512 + 512 * N_OUT_PAD)
    transcendentals = b * (256 + 512)                         # two sigmoid layers
    w_bytes = 2 * (n_in * 256 + 256 * 512 + 512 * N_OUT_PAD)  # bf16 weights
    bias_bytes = 4 * (256 + 512 + N_OUT_PAD)
    io_bytes = 4 * b * n_in + 4 * b * N_OUT_PAD               # f32 in, f32 (padded) out
    return pl.CostEstimate(flops=flops, transcendentals=transcendentals,
                           bytes_accessed=w_bytes + bias_bytes + io_bytes)


def prepare_params(params):
    """One-time prep (hoisted out of the forward pass): bf16 weights, padded final layer."""
    w1, b1, w2, b2, w3, b3 = params
    n_out = w3.shape[1]
    w3p = jnp.pad(w3, ((0, 0), (0, N_OUT_PAD - n_out))).astype(jnp.bfloat16)
    b3p = jnp.pad(b3, ((0, 0), (0, N_OUT_PAD - n_out)))       # f32 bias, zero-padded
    prepared = (w1.astype(jnp.bfloat16), b1, w2.astype(jnp.bfloat16), b2, w3p, b3p)
    return prepared, n_out


def mlp_forward(x_nchw, prepared_params, n_out, *, tile_b=1024):
    """x_nchw: [B, C, H, W] float32. Returns logits [B, n_out] float32."""
    b = x_nchw.shape[0]
    x2d = x_nchw.reshape(b, -1)            # nn.Flatten(); stays f32, cast inside kernel
    n_in = x2d.shape[1]
    w1b, b1, w2b, b2, w3b, b3p = prepared_params

    kernel = functools.partial(mlp_kernel, act_dtype=_act_dtype())
    cost = _cost_estimate(b, n_in)

    if b <= tile_b:
        # Small batch: all operands fit VMEM; no grid / tiling needed.
        vmem = pl.BlockSpec(memory_space=pltpu.MemorySpace.VMEM)
        out = pl.pallas_call(
            kernel,
            out_shape=jax.ShapeDtypeStruct((b, N_OUT_PAD), jnp.float32),
            in_specs=[vmem] * 7,
            out_specs=vmem,
            compiler_params=pltpu.CompilerParams(vmem_limit_bytes=VMEM_LIMIT_BYTES),
            cost_estimate=cost,
        )(x2d, w1b, b1, w2b, b2, w3b, b3p)
    else:
        # Large batch: tile the batch axis; weights/biases use a constant index_map so they
        # stay VMEM-resident across grid steps. b > tile_b guarantees >= 2 grid steps, so
        # the "parallel" axis can shard over both v7x TensorCores. No batch padding: the
        # partial last block is masked by Pallas (rows are independent).
        grid = (pl.cdiv(b, tile_b),)

        def const(shape):
            return pl.BlockSpec(shape, lambda i: (0, 0))

        out = pl.pallas_call(
            kernel,
            out_shape=jax.ShapeDtypeStruct((b, N_OUT_PAD), jnp.float32),
            grid=grid,
            in_specs=[
                pl.BlockSpec((tile_b, n_in), lambda i: (i, 0)),
                const(w1b.shape), const(b1.shape),
                const(w2b.shape), const(b2.shape),
                const(w3b.shape), const(b3p.shape),
            ],
            out_specs=pl.BlockSpec((tile_b, N_OUT_PAD), lambda i: (i, 0)),
            compiler_params=pltpu.CompilerParams(
                dimension_semantics=("parallel",),
                vmem_limit_bytes=VMEM_LIMIT_BYTES),
            cost_estimate=cost,
        )(x2d, w1b, b1, w2b, b2, w3b, b3p)

    return out[:, :n_out]


def init_params(key, n_inputs, n_outputs):
    """Deterministic init mimicking PyTorch nn.Linear (uniform +-1/sqrt(fan_in)).
    Weights stored as [in, out]; biases stored as [1, out] for 2-D broadcasting."""
    dims = [(n_inputs, 256), (256, 512), (512, n_outputs)]
    params = []
    for i, (fan_in, fan_out) in enumerate(dims):
        kw, kb = jax.random.split(jax.random.fold_in(key, i))
        bound = 1.0 / (fan_in ** 0.5)
        w = jax.random.uniform(kw, (fan_in, fan_out), jnp.float32, -bound, bound)
        bvec = jax.random.uniform(kb, (1, fan_out), jnp.float32, -bound, bound)
        params += [w, bvec]
    return tuple(params)


def mlp_reference(x_nchw, params, act_dtype):
    """Pure-JAX reference mirroring the kernel's bf16 rounding and sigmoid formulation."""
    b = x_nchw.shape[0]
    x = x_nchw.reshape(b, -1)
    w1, b1, w2, b2, w3, b3 = params
    bf = lambda a: a.astype(jnp.bfloat16)
    h1 = _sigmoid(jnp.dot(bf(x), bf(w1), preferred_element_type=jnp.float32) + b1, act_dtype)
    h2 = _sigmoid(jnp.dot(bf(h1), bf(w2), preferred_element_type=jnp.float32) + b2, act_dtype)
    return jnp.dot(bf(h2), bf(w3), preferred_element_type=jnp.float32) + b3


if __name__ == "__main__":
    key = jax.random.PRNGKey(0)
    kx, kp = jax.random.split(key)

    # batch=2, channels=4, spatial=16 -> n_inputs = 4*16*16 = 1024
    B, C, H, W = 2, 4, 16, 16
    n_inputs = C * H * W
    n_outputs = 10

    x = jax.random.normal(kx, (B, C, H, W), jnp.float32)
    params = init_params(kp, n_inputs, n_outputs)
    prepared, n_out = prepare_params(params)   # one-time weight prep (bf16 cast + pad)
    act_dt = _act_dtype()

    # Small-batch (fully VMEM-resident, no grid) path.
    out = jax.block_until_ready(mlp_forward(x, prepared, n_out))
    ref = mlp_reference(x, params, act_dt)
    assert out.shape == (B, n_outputs)
    assert jnp.allclose(out, ref, atol=1e-2, rtol=1e-2), "small-batch mismatch vs. JAX reference"

    # Batch-tiled (gridded, megacore-parallel) path, incl. a masked partial last block.
    xl = jax.random.normal(jax.random.fold_in(kx, 1), (1000, C, H, W), jnp.float32)
    out_l = jax.block_until_ready(mlp_forward(xl, prepared, n_out, tile_b=256))
    ref_l = mlp_reference(xl, params, act_dt)
    assert out_l.shape == (1000, n_outputs)
    assert jnp.allclose(out_l, ref_l, atol=1e-2, rtol=1e-2), "tiled-batch mismatch vs. JAX reference"

    print("KERNEL_OK")
</pallas_src>

<mosaic_0001>
module attributes {stable_mosaic.version = 11 : i64} {
  func.func @mlp_kernel(%arg0: memref<2x1024xf32, #tpu.memory_space<vmem>>, %arg1: memref<1024x256xbf16, #tpu.memory_space<vmem>>, %arg2: memref<1x256xf32, #tpu.memory_space<vmem>>, %arg3: memref<256x512xbf16, #tpu.memory_space<vmem>>, %arg4: memref<1x512xf32, #tpu.memory_space<vmem>>, %arg5: memref<512x128xbf16, #tpu.memory_space<vmem>>, %arg6: memref<1x128xf32, #tpu.memory_space<vmem>>, %arg7: memref<2x128xf32, #tpu.memory_space<vmem>>) attributes {dimension_semantics = [], scalar_prefetch = 0 : i64, scratch_operands = 0 : i64, tpu.core_type = #tpu.core_type<tc>} {
    %c0 = arith.constant 0 : index
    %c0_0 = arith.constant 0 : index
    %0 = vector.load %arg0[%c0, %c0_0] : memref<2x1024xf32, #tpu.memory_space<vmem>>, vector<2x1024xf32>
    %1 = arith.truncf %0 : vector<2x1024xf32> to vector<2x1024xbf16>
    %c0_1 = arith.constant 0 : index
    %c0_2 = arith.constant 0 : index
    %2 = vector.load %arg1[%c0_1, %c0_2] : memref<1024x256xbf16, #tpu.memory_space<vmem>>, vector<1024x256xbf16>
    %cst = arith.constant dense<0.000000e+00> : vector<2x256xf32>
    %3 = tpu.matmul %1, %2, %cst {dimension_numbers = #tpu.dot_dimension_numbers<[1], [0], [0], [1], [0, 0, 1, 1], [], []>} : vector<2x1024xbf16>, vector<1024x256xbf16>, vector<2x256xf32> -> vector<2x256xf32>
    %c0_3 = arith.constant 0 : index
    %c0_4 = arith.constant 0 : index
    %4 = vector.load %arg2[%c0_3, %c0_4] : memref<1x256xf32, #tpu.memory_space<vmem>>, vector<1x256xf32>
    %5 = vector.broadcast %4 : vector<1x256xf32> to vector<2x256xf32>
    %6 = arith.addf %3, %5 : vector<2x256xf32>
    %cst_5 = arith.constant 5.000000e-01 : f32
    %7 = vector.broadcast %cst_5 : f32 to vector<2x256xf32>
    %8 = arith.mulf %7, %6 : vector<2x256xf32>
    %9 = math.tanh %8 : vector<2x256xf32>
    %cst_6 = arith.constant 5.000000e-01 : f32
    %10 = vector.broadcast %cst_6 : f32 to vector<2x256xf32>
    %11 = arith.mulf %10, %9 : vector<2x256xf32>
    %cst_7 = arith.constant 5.000000e-01 : f32
    %12 = vector.broadcast %cst_7 : f32 to vector<2x256xf32>
    %13 = arith.addf %11, %12 : vector<2x256xf32>
    %14 = arith.truncf %13 : vector<2x256xf32> to vector<2x256xbf16>
    %c0_8 = arith.constant 0 : index
    %c0_9 = arith.constant 0 : index
    %15 = vector.load %arg3[%c0_8, %c0_9] : memref<256x512xbf16, #tpu.memory_space<vmem>>, vector<256x512xbf16>
    %cst_10 = arith.constant dense<0.000000e+00> : vector<2x512xf32>
    %16 = tpu.matmul %14, %15, %cst_10 {dimension_numbers = #tpu.dot_dimension_numbers<[1], [0], [0], [1], [0, 0, 1, 1], [], []>} : vector<2x256xbf16>, vector<256x512xbf16>, vector<2x512xf32> -> vector<2x512xf32>
    %c0_11 = arith.constant 0 : index
    %c0_12 = arith.constant 0 : index
    %17 = vector.load %arg4[%c0_11, %c0_12] : memref<1x512xf32, #tpu.memory_space<vmem>>, vector<1x512xf32>
    %18 = vector.broadcast %17 : vector<1x512xf32> to vector<2x512xf32>
    %19 = arith.addf %16, %18 : vector<2x512xf32>
    %cst_13 = arith.constant 5.000000e-01 : f32
    %20 = vector.broadcast %cst_13 : f32 to vector<2x512xf32>
    %21 = arith.mulf %20, %19 : vector<2x512xf32>
    %22 = math.tanh %21 : vector<2x512xf32>
    %cst_14 = arith.constant 5.000000e-01 : f32
    %23 = vector.broadcast %cst_14 : f32 to vector<2x512xf32>
    %24 = arith.mulf %23, %22 : vector<2x512xf32>
    %cst_15 = arith.constant 5.000000e-01 : f32
    %25 = vector.broadcast %cst_15 : f32 to vector<2x512xf32>
    %26 = arith.addf %24, %25 : vector<2x512xf32>
    %27 = arith.truncf %26 : vector<2x512xf32> to vector<2x512xbf16>
    %c0_16 = arith.constant 0 : index
    %c0_17 = arith.constant 0 : index
    %28 = vector.load %arg5[%c0_16, %c0_17] : memref<512x128xbf16, #tpu.memory_space<vmem>>, vector<512x128xbf16>
    %cst_18 = arith.constant dense<0.000000e+00> : vector<2x128xf32>
    %29 = tpu.matmul %27, %28, %cst_18 {dimension_numbers = #tpu.dot_dimension_numbers<[1], [0], [0], [1], [0, 0, 1, 1], [], []>} : vector<2x512xbf16>, vector<512x128xbf16>, vector<2x128xf32> -> vector<2x128xf32>
    %c0_19 = arith.constant 0 : index
    %c0_20 = arith.constant 0 : index
    %30 = vector.load %arg6[%c0_19, %c0_20] : memref<1x128xf32, #tpu.memory_space<vmem>>, vector<1x128xf32>
    %31 = vector.broadcast %30 : vector<1x128xf32> to vector<2x128xf32>
    %32 = arith.addf %29, %31 : vector<2x128xf32>
    %c0_21 = arith.constant 0 : index
    %c0_22 = arith.constant 0 : index
    %33 = vector.load %arg7[%c0_21, %c0_22] : memref<2x128xf32, #tpu.memory_space<vmem>>, vector<2x128xf32>
    tpu.vector_store %arg7[%c0_21, %c0_22], %32 {strides = array<i32>} : memref<2x128xf32, #tpu.memory_space<vmem>>, vector<2x128xf32>,
    return
  }
}

</mosaic_0001>

<bundles_post_ra>
// kernel: tpu_custom_call.1
= control target key start
LH: loop header
LB: loop body
LE: loop exit
PB: predicated region body
PF: predicated region fallthrough
CT: control target
= control target key end

     0   :  { %12 = vsyncpa [#allocation3], 0  ;;  %s3441_s0 = inlined_call_operand.hbm [shape: f32[2,1024], index: 0, kind: input, shape index: {}]   ;;  %s3442_s1 = inlined_call_operand.hbm [shape: bf16[1024,256], index: 1, kind: input, shape index: {}]   ;;  %s3443_s2 = inlined_call_operand.hbm [shape: f32[1,256], index: 2, kind: input, shape index: {}]   ;;  %s3444_s3 = inlined_call_operand.hbm [shape: bf16[256,512], index: 3, kind: input, shape index: {}]   ;;  %s3445_s4 = inlined_call_operand.hbm [shape: f32[1,512], index: 4, kind: input, shape index: {}]   ;;  %s3446_s5 = inlined_call_operand.hbm [shape: bf16[512,128], index: 5, kind: input, shape index: {}]   ;;  %s3447_s6 = inlined_call_operand.vmem [shape: f32[1,128], index: 6, kind: input, shape index: {}]   ;;  %s3448_s7 = inlined_call_operand.hbm [shape: f32[2,128], index: 7, kind: output, shape index: {}]  }
   0x1   :  { %13 = vsyncpa [#allocation6], 0 }
   0x2   :  { %14 = vsyncpa [#allocation9], 0 }
   0x3   :  { %15 = vsyncpa [#allocation12], 0  ;;  %s32_s26 = sshll.u32 %s3442_s1, 4  ;;  %s33_s26 = int_to_ptr.hbm [resolvable:$true] %s32_s26 }
   0x4   :  { %16 = vsyncpa [#allocation4], 0  ;;  %s3313_s27 = smov [#allocation5]   ;;  %s56_s8 = sshll.u32 %s3444_s3, 4  ;;  %s57_s8 = int_to_ptr.hbm [resolvable:$true] %s56_s8 }
   0x5   :  { %s34_s28 = sshll.u32 %s3313_s27, 4  ;;  %s3314_s9 = smov 128   ;;  %s35_s28 = int_to_ptr.vmem [resolvable:$true] %s34_s28 }
   0x6   :  { %s3315_s10 = smov 8   ;;  %s3316_s11 = smov [#allocation8]  }
   0x7   :  { %40 = dma.hbm_to_vmem [thread:$0]  %s33_s26, 16384, %s35_s28, [#allocation6], %s3314_s9, %s3314_s9, %s3315_s10  }
   0x8   :  { %s58_s12 = sshll.u32 %s3316_s11, 4  ;;  %s3317_s13 = smov 256   ;;  %s59_s12 = int_to_ptr.vmem [resolvable:$true] %s58_s12 }
   0x9   :  { %s3318_s14 = smov 16   ;;  %s22_s16 = sshll.u32 %s3441_s0, 4  ;;  %s23_s16 = int_to_ptr.hbm [resolvable:$true] %s22_s16 }
   0xa   :  { %64 = dma.hbm_to_vmem [thread:$0]  %s57_s8, 8192, %s59_s12, [#allocation9], %s3317_s13, %s3317_s13, %s3318_s14  }
   0xb   :  { %s3319_s17 = smov [#allocation2]   ;;  %s46_s20 = sshll.u32 %s3443_s2, 4  ;;  %s47_s20 = int_to_ptr.hbm [resolvable:$true] %s46_s20 }
   0xc   :  { %s24_s18 = sshll.u32 %s3319_s17, 4  ;;  %s3320_s21 = smov [#allocation7]   ;;  %s25_s18 = int_to_ptr.vmem [resolvable:$true] %s24_s18 }
   0xd   :  { %27 = dma.hbm_to_vmem [thread:$0]  %s23_s16, 256, %s25_s18, [#allocation3]  }
   0xe   :  { %s48_s22 = sshll.u32 %s3320_s21, 4  ;;  %s70_s25 = sshll.u32 %s3445_s4, 4  ;;  %s49_s22 = int_to_ptr.vmem [resolvable:$true] %s48_s22  ;;  %s71_s25 = int_to_ptr.hbm [resolvable:$true] %s70_s25 }
   0xf   :  { %51 = dma.hbm_to_vmem [thread:$0]  %s47_s20, 32, %s49_s22, [#allocation6]  }
  0x10   :  { %s80_s27 = sshll.u32 %s3446_s5, 4  ;;  %s3321_s28 = smov [#allocation10]   ;;  %s81_s27 = int_to_ptr.hbm [resolvable:$true] %s80_s27 }
  0x11   :  { %s72_s29 = sshll.u32 %s3321_s28, 4  ;;  %s3322_s2 = smov [#allocation11]   ;;  %s73_s29 = int_to_ptr.vmem [resolvable:$true] %s72_s29 }
  0x12   :  { %75 = dma.hbm_to_vmem [thread:$0]  %s71_s25, 64, %s73_s29, [#allocation9]  }
  0x13   :  { %s82_s30 = sshll.u32 %s3322_s2, 4  ;;  %s3323_s8 = smov 64   ;;  %s83_s30 = int_to_ptr.vmem [resolvable:$true] %s82_s30 }
  0x14   :  { %s3324_s9 = smov 4  }
  0x15   :  { %88 = dma.hbm_to_vmem [thread:$0]  %s81_s27, 4096, %s83_s30, [#allocation12], %s3323_s8, %s3323_s8, %s3324_s9  }
  0x16   :  { %3303 = dma.done.wait [#allocation3], 256  }
  0x17   :  { %3304 = vsyncadd [#allocation3], 4294967040 }
  0x18   :  { %3305 = dma.done.wait [#allocation6], 16416  }
  0x19   :  { %3306 = vsyncadd [#allocation6], 4294950880 }
  0x1a   :  { %3307 = dma.done.wait [#allocation9], 8256  }
  0x1b   :  { %3308 = vsyncadd [#allocation9], 4294959040 }
  0x1c   :  { %3309 = dma.done.wait [#allocation12], 4096  }
  0x1d   :  { %3310 = vsyncadd [#allocation12], 4294963200  ;;  %v2047_v0 = vld [vmem:[#allocation5 + $0x70] sm:$0xf]  ;;  %v2900_v1 = vld [vmem:[#allocation5 + $0x74] sm:$0xf0] }
  0x1e   :  { %v2111_v2 = vld [vmem:[#allocation5 + $0xf0] sm:$0xf]  ;;  %v2048_v3 = vor.u32 %v2900_v1, %v2047_v0  ;;  %v2916_v4 = vld [vmem:[#allocation5 + $0xf4] sm:$0xf0]  ;;  %v2039_v11 = vld [vmem:[#allocation5 + $0x60] sm:$0xf] }
  0x1f   :  { %v2175_v5 = vld [vmem:[#allocation5 + $0x170] sm:$0xf]  ;;  %v2932_v6 = vld [vmem:[#allocation5 + $0x174] sm:$0xf0]  ;;  %v2112_v7 = vor.u32 %v2916_v4, %v2111_v2  ;;  %v2898_v13 = vld [vmem:[#allocation5 + $0x64] sm:$0xf0] }
  0x20   :  { %v2176_v8 = vor.u32 %v2932_v6, %v2175_v5  ;;  %v2239_v9 = vld [vmem:[#allocation5 + $0x1f0] sm:$0xf]  ;;  %v2948_v10 = vld [vmem:[#allocation5 + $0x1f4] sm:$0xf0]  ;;  %920 = vmatpush.bf16.msra.mxu0 %v2048_v3  ;;  %v2103_v14 = vld [vmem:[#allocation5 + $0xe0] sm:$0xf]  ;;  %v2040_v16 = vor.u32 %v2898_v13, %v2039_v11 }
  0x21   :  { %v2240_v12 = vor.u32 %v2948_v10, %v2239_v9  ;;  %v2914_v15 = vld [vmem:[#allocation5 + $0xe4] sm:$0xf0]  ;;  %933 = vmatpush.bf16.msra.mxu1 %v2112_v7  ;;  %v2167_v18 = vld [vmem:[#allocation5 + $0x160] sm:$0xf]  ;;  %v2031_v23 = vld [vmem:[#allocation5 + $0x50] sm:$0xf] }
  0x22   :  { %946 = vmatpush.bf16.msra.mxu2 %v2176_v8  ;;  %v2104_v17 = vor.u32 %v2914_v15, %v2103_v14  ;;  %v2930_v19 = vld [vmem:[#allocation5 + $0x164] sm:$0xf0]  ;;  %v2231_v20 = vld [vmem:[#allocation5 + $0x1e0] sm:$0xf]  ;;  %v2896_v24 = vld [vmem:[#allocation5 + $0x54] sm:$0xf0] }
  0x23   :  { %959 = vmatpush.bf16.msra.mxu3 %v2240_v12  ;;  %v2168_v21 = vor.u32 %v2930_v19, %v2167_v18  ;;  %v2946_v22 = vld [vmem:[#allocation5 + $0x1e4] sm:$0xf0]  ;;  %v2095_v26 = vld [vmem:[#allocation5 + $0xd0] sm:$0xf]  ;;  %v2912_v27 = vld [vmem:[#allocation5 + $0xd4] sm:$0xf0]  ;;  %v2032_v29 = vor.u32 %v2896_v24, %v2031_v23 }
  0x24   :  { %v2232_v25 = vor.u32 %v2946_v22, %v2231_v20  ;;  %v2159_v28 = vld [vmem:[#allocation5 + $0x150] sm:$0xf]  ;;  %921 = vmatpush.bf16.msra.mxu0 %v2040_v16  ;;  %v2928_v30 = vld [vmem:[#allocation5 + $0x154] sm:$0xf0]  ;;  %v2096_v33 = vor.u32 %v2912_v27, %v2095_v26  ;;  %v2023_v35 = vld [vmem:[#allocation5 + $0x40] sm:$0xf] }
  0x25   :  { %v2223_v31 = vld [vmem:[#allocation5 + $0x1d0] sm:$0xf]  ;;  %v2944_v32 = vld [vmem:[#allocation5 + $0x1d4] sm:$0xf0]  ;;  %934 = vmatpush.bf16.msra.mxu1 %v2104_v17  ;;  %v2160_v34 = vor.u32 %v2928_v30, %v2159_v28  ;;  %v2894_v36 = vld [vmem:[#allocation5 + $0x44] sm:$0xf0] }
  0x26   :  { %947 = vmatpush.bf16.msra.mxu2 %v2168_v21  ;;  %v2087_v37 = vld [vmem:[#allocation5 + $0xc0] sm:$0xf]  ;;  %v2224_v38 = vor.u32 %v2944_v32, %v2223_v31  ;;  %v2910_v39 = vld [vmem:[#allocation5 + $0xc4] sm:$0xf0]  ;;  %v2024_v44 = vor.u32 %v2894_v36, %v2023_v35  ;;  %v2015_v47 = vld [vmem:[#allocation5 + $0x30] sm:$0xf] }
  0x27   :  { %960 = vmatpush.bf16.msra.mxu3 %v2232_v25  ;;  %v2151_v40 = vld [vmem:[#allocation5 + $0x140] sm:$0xf]  ;;  %v2926_v41 = vld [vmem:[#allocation5 + $0x144] sm:$0xf0]  ;;  %v2088_v45 = vor.u32 %v2910_v39, %v2087_v37  ;;  %v2892_v48 = vld [vmem:[#allocation5 + $0x34] sm:$0xf0] }
  0x28   :  { %v2215_v42 = vld [vmem:[#allocation5 + $0x1c0] sm:$0xf]  ;;  %v2942_v43 = vld [vmem:[#allocation5 + $0x1c4] sm:$0xf0]  ;;  %922 = vmatpush.bf16.msra.mxu0 %v2032_v29  ;;  %v2152_v46 = vor.u32 %v2926_v41, %v2151_v40  ;;  %v2079_v49 = vld [vmem:[#allocation5 + $0xb0] sm:$0xf]  ;;  %v2016_v56 = vor.u32 %v2892_v48, %v2015_v47 }
  0x29   :  { %935 = vmatpush.bf16.msra.mxu1 %v2096_v33  ;;  %v2216_v50 = vor.u32 %v2942_v43, %v2215_v42  ;;  %v2908_v51 = vld [vmem:[#allocation5 + $0xb4] sm:$0xf0]  ;;  %v2143_v52 = vld [vmem:[#allocation5 + $0x130] sm:$0xf]  ;;  %v2007_v59 = vld [vmem:[#allocation5 + $0x20] sm:$0xf] }
  0x2a   :  { %948 = vmatpush.bf16.msra.mxu2 %v2160_v34  ;;  %v2924_v53 = vld [vmem:[#allocation5 + $0x134] sm:$0xf0]  ;;  %v2207_v54 = vld [vmem:[#allocation5 + $0x1b0] sm:$0xf]  ;;  %v2080_v57 = vor.u32 %v2908_v51, %v2079_v49  ;;  %v2890_v60 = vld [vmem:[#allocation5 + $0x24] sm:$0xf0] }
  0x2b   :  { %961 = vmatpush.bf16.msra.mxu3 %v2224_v38  ;;  %v2940_v55 = vld [vmem:[#allocation5 + $0x1b4] sm:$0xf0]  ;;  %v2144_v58 = vor.u32 %v2924_v53, %v2143_v52  ;;  %v2071_v61 = vld [vmem:[#allocation5 + $0xa0] sm:$0xf]  ;;  %v2906_v63 = vld [vmem:[#allocation5 + $0xa4] sm:$0xf0]  ;;  %v2008_v4 = vor.u32 %v2890_v60, %v2007_v59 }
  0x2c   :  { %923 = vmatpush.bf16.msra.mxu0 %v2024_v44  ;;  %v2208_v62 = vor.u32 %v2940_v55, %v2207_v54  ;;  %v2135_v0 = vld [vmem:[#allocation5 + $0x120] sm:$0xf]  ;;  %v2922_v1 = vld [vmem:[#allocation5 + $0x124] sm:$0xf0]  ;;  %v2072_v5 = vor.u32 %v2906_v63, %v2071_v61  ;;  %v1999_v7 = vld [vmem:[#allocation5 + $0x10] sm:$0xf] }
  0x2d   :  { %936 = vmatpush.bf16.msra.mxu1 %v2088_v45  ;;  %v2199_v2 = vld [vmem:[#allocation5 + $0x1a0] sm:$0xf]  ;;  %v2938_v3 = vld [vmem:[#allocation5 + $0x1a4] sm:$0xf0]  ;;  %v2136_v6 = vor.u32 %v2922_v1, %v2135_v0  ;;  %v2888_v8 = vld [vmem:[#allocation5 + $0x14] sm:$0xf0] }
  0x2e   :  { %949 = vmatpush.bf16.msra.mxu2 %v2152_v46  ;;  %v2063_v9 = vld [vmem:[#allocation5 + $0x90] sm:$0xf]  ;;  %v2200_v10 = vor.u32 %v2938_v3, %v2199_v2  ;;  %v2904_v11 = vld [vmem:[#allocation5 + $0x94] sm:$0xf0]  ;;  %v2000_v16 = vor.u32 %v2888_v8, %v1999_v7  ;;  %v1991_v17 = vld [vmem:[#allocation5] sm:$0xf] }
  0x2f   :  { %962 = vmatpush.bf16.msra.mxu3 %v2216_v50  ;;  %v2127_v12 = vld [vmem:[#allocation5 + $0x110] sm:$0xf]  ;;  %v2920_v13 = vld [vmem:[#allocation5 + $0x114] sm:$0xf0]  ;;  %v2886_v18 = vld [vmem:[#allocation5 + $0x4] sm:$0xf0]  ;;  %v2064_v19 = vor.u32 %v2904_v11, %v2063_v9 }
  0x30   :  { %924 = vmatpush.bf16.msra.mxu0 %v2016_v56  ;;  %v2191_v14 = vld [vmem:[#allocation5 + $0x190] sm:$0xf]  ;;  %v2936_v15 = vld [vmem:[#allocation5 + $0x194] sm:$0xf0]  ;;  %v2128_v20 = vor.u32 %v2920_v13, %v2127_v12  ;;  %v2055_v21 = vld [vmem:[#allocation5 + $0x80] sm:$0xf]  ;;  %v1992_v31 = vor.u32 %v2886_v18, %v1991_v17 }
  0x31   :  { %937 = vmatpush.bf16.msra.mxu1 %v2080_v57  ;;  %v2902_v22 = vld [vmem:[#allocation5 + $0x84] sm:$0xf0]  ;;  %v2119_v23 = vld [vmem:[#allocation5 + $0x100] sm:$0xf]  ;;  %v2192_v24 = vor.u32 %v2936_v15, %v2191_v14  ;;  %v2303_v28 = vld [vmem:[#allocation5 + $0x270] sm:$0xf] }
  0x32   :  { %950 = vmatpush.bf16.msra.mxu2 %v2144_v58  ;;  %v2918_v25 = vld [vmem:[#allocation5 + $0x104] sm:$0xf0]  ;;  %v2183_v26 = vld [vmem:[#allocation5 + $0x180] sm:$0xf]  ;;  %v2964_v29 = vld [vmem:[#allocation5 + $0x274] sm:$0xf0]  ;;  %v2056_v35 = vor.u32 %v2902_v22, %v2055_v21 }
  0x33   :  { %963 = vmatpush.bf16.msra.mxu3 %v2208_v62  ;;  %v2934_v27 = vld [vmem:[#allocation5 + $0x184] sm:$0xf0]  ;;  %v2367_v30 = vld [vmem:[#allocation5 + $0x2f0] sm:$0xf]  ;;  %v2980_v32 = vld [vmem:[#allocation5 + $0x2f4] sm:$0xf0]  ;;  %v2120_v36 = vor.u32 %v2918_v25, %v2119_v23  ;;  %v2304_v40 = vor.u32 %v2964_v29, %v2303_v28 }
  0x34   :  { %925 = vmatpush.bf16.msra.mxu0 %v2008_v4  ;;  %v2431_v33 = vld [vmem:[#allocation5 + $0x370] sm:$0xf]  ;;  %v2996_v34 = vld [vmem:[#allocation5 + $0x374] sm:$0xf0]  ;;  %v2184_v39 = vor.u32 %v2934_v27, %v2183_v26  ;;  %v2368_v41 = vor.u32 %v2980_v32, %v2367_v30  ;;  %v2295_v43 = vld [vmem:[#allocation5 + $0x260] sm:$0xf] }
  0x35   :  { %938 = vmatpush.bf16.msra.mxu1 %v2072_v5  ;;  %v2495_v37 = vld [vmem:[#allocation5 + $0x3f0] sm:$0xf]  ;;  %v3012_v38 = vld [vmem:[#allocation5 + $0x3f4] sm:$0xf0]  ;;  %v2432_v42 = vor.u32 %v2996_v34, %v2431_v33  ;;  %v2962_v44 = vld [vmem:[#allocation5 + $0x264] sm:$0xf0] }
  0x36   :  { %951 = vmatpush.bf16.msra.mxu2 %v2136_v6  ;;  %v2359_v45 = vld [vmem:[#allocation5 + $0x2e0] sm:$0xf]  ;;  %v2496_v46 = vor.u32 %v3012_v38, %v2495_v37  ;;  %v2978_v47 = vld [vmem:[#allocation5 + $0x2e4] sm:$0xf0]  ;;  %v115_v52 = vld [vmem:[#allocation2] sm:$0xff]  ;;  %v2296_v53 = vor.u32 %v2962_v44, %v2295_v43  ;;  %s3325_s10 = smov [#allocation13]  }
  0x37   :  { %964 = vmatpush.bf16.msra.mxu3 %v2200_v10  ;;  %v2423_v48 = vld [vmem:[#allocation5 + $0x360] sm:$0xf]  ;;  %v2994_v49 = vld [vmem:[#allocation5 + $0x364] sm:$0xf0]  ;;  %119 = vst [vmem:[#allocation1] ss:$4 sm:$0xff] %v115_v52  ;;  %v2360_v54 = vor.u32 %v2978_v47, %v2359_v45 }
  0x38   :  { %926 = vmatpush.bf16.msra.mxu0 %v2000_v16  ;;  %v2487_v50 = vld [vmem:[#allocation5 + $0x3e0] sm:$0xf]  ;;  %v3010_v51 = vld [vmem:[#allocation5 + $0x3e4] sm:$0xf0]  ;;  %v2424_v55 = vor.u32 %v2994_v49, %v2423_v48  ;;  %v2287_v56 = vld [vmem:[#allocation5 + $0x250] sm:$0xf] }
  0x39   :  { %939 = vmatpush.bf16.msra.mxu1 %v2064_v19  ;;  %v2960_v57 = vld [vmem:[#allocation5 + $0x254] sm:$0xf0]  ;;  %v2351_v58 = vld [vmem:[#allocation5 + $0x2d0] sm:$0xf]  ;;  %v2488_v59 = vor.u32 %v3010_v51, %v2487_v50  ;;  %v2279_v2 = vld [vmem:[#allocation5 + $0x240] sm:$0xf] }
  0x3a   :  { %952 = vmatpush.bf16.msra.mxu2 %v2128_v20  ;;  %v2976_v60 = vld [vmem:[#allocation5 + $0x2d4] sm:$0xf0]  ;;  %v2415_v61 = vld [vmem:[#allocation5 + $0x350] sm:$0xf]  ;;  %v2288_v1 = vor.u32 %v2960_v57, %v2287_v56  ;;  %v2958_v3 = vld [vmem:[#allocation5 + $0x244] sm:$0xf0] }
  0x3b   :  { %965 = vmatpush.bf16.msra.mxu3 %v2192_v24  ;;  %v2992_v62 = vld [vmem:[#allocation5 + $0x354] sm:$0xf0]  ;;  %v2479_v63 = vld [vmem:[#allocation5 + $0x3d0] sm:$0xf]  ;;  %v2352_v4 = vor.u32 %v2976_v60, %v2351_v58  ;;  %v2343_v6 = vld [vmem:[#allocation5 + $0x2c0] sm:$0xf]  ;;  %v2280_v15 = vor.u32 %v2958_v3, %v2279_v2 }
  0x3c   :  { %927 = vmatpush.bf16.msra.mxu0 %v1992_v31  ;;  %v3008_v0 = vld [vmem:[#allocation5 + $0x3d4] sm:$0xf0]  ;;  %v2416_v5 = vor.u32 %v2992_v62, %v2415_v61  ;;  %v2974_v7 = vld [vmem:[#allocation5 + $0x2c4] sm:$0xf0]  ;;  %v2407_v8 = vld [vmem:[#allocation5 + $0x340] sm:$0xf] }
  0x3d   :  { %940 = vmatpush.bf16.msra.mxu1 %v2056_v35  ;;  %v2480_v9 = vor.u32 %v3008_v0, %v2479_v63  ;;  %v2990_v10 = vld [vmem:[#allocation5 + $0x344] sm:$0xf0]  ;;  %v2471_v11 = vld [vmem:[#allocation5 + $0x3c0] sm:$0xf]  ;;  %v2344_v16 = vor.u32 %v2974_v7, %v2343_v6  ;;  %v2271_v22 = vld [vmem:[#allocation5 + $0x230] sm:$0xf] }
  0x3e   :  { %953 = vmatpush.bf16.msra.mxu2 %v2120_v36  ;;  %v3006_v12 = vld [vmem:[#allocation5 + $0x3c4] sm:$0xf0]  ;;  %v124_v13 = vld.sshfl [vmem:[#allocation1 + $0x10] sm:$0xff pattern:$0x73625140]  ;;  %v2408_v21 = vor.u32 %v2990_v10, %v2407_v8  ;;  %s1974_s11 = sshll.u32 %s3325_s10, 4  ;;  %s1975_s11 = int_to_ptr.vmem [resolvable:$true] %s1974_s11 }
  0x3f   :  { %966 = vmatpush.bf16.msra.mxu3 %v2184_v39  ;;  %v122_v14 = vld.sshfl [vmem:[#allocation1] sm:$0xff pattern:$0x73625140]  ;;  %v3384_v17 = vpack.c.bf16 %v124_v13, %v124_v13  ;;  %v125_v19 = vld.sshfl [vmem:[#allocation1 + $0x18] sm:$0xff pattern:$0x73625140]  ;;  %v2472_v27 = vor.u32 %v3006_v12, %v2471_v11 }
  0x40   :  { %972 = vmatpush.bf16.msrb.mxu0 %v2304_v40  ;;  %v3386_v18 = vpack.c.bf16 %v122_v14, %v122_v14  ;;  %v123_v20 = vld.sshfl [vmem:[#allocation1 + $0x8] sm:$0xff pattern:$0x73625140]  ;;  %v2956_v23 = vld [vmem:[#allocation5 + $0x234] sm:$0xf0]  ;;  %v3388_v25 = vpack.c.bf16 %v125_v19, %v125_v19  ;;  %s1976_s14 = sshll.u32 %s3448_s7, 4  ;;  %s1977_s14 = int_to_ptr.hbm [resolvable:$true] %s1976_s14 }
  0x41   :  { %985 = vmatpush.bf16.msrb.mxu1 %v2368_v41  ;;  %v2335_v24 = vld [vmem:[#allocation5 + $0x2b0] sm:$0xf]  ;;  %v3390_v26 = vpack.c.bf16 %v123_v20, %v123_v20  ;;  %954 = vmatmul.bf16.vlgmr.msra.gmra.mxu2 %v3384_v17  ;;  %v2972_v28 = vld [vmem:[#allocation5 + $0x2b4] sm:$0xf0]  ;;  %v2272_v33 = vor.u32 %v2956_v23, %v2271_v22  ;;  %v2263_v36 = vld [vmem:[#allocation5 + $0x220] sm:$0xf] }
  0x42   :  { %998 = vmatpush.bf16.msrb.mxu2 %v2432_v42  ;;  %v2399_v29 = vld [vmem:[#allocation5 + $0x330] sm:$0xf]  ;;  %v2988_v30 = vld [vmem:[#allocation5 + $0x334] sm:$0xf0]  ;;  %928 = vmatmul.bf16.vlgmr.msra.gmra.mxu0 %v3386_v18  ;;  %v2336_v34 = vor.u32 %v2972_v28, %v2335_v24  ;;  %v2954_v37 = vld [vmem:[#allocation5 + $0x224] sm:$0xf0] }
  0x43   :  { %1011 = vmatpush.bf16.msrb.mxu3 %v2496_v46  ;;  %v2463_v31 = vld [vmem:[#allocation5 + $0x3b0] sm:$0xf]  ;;  %v3004_v32 = vld [vmem:[#allocation5 + $0x3b4] sm:$0xf0]  ;;  %941 = vmatmul.bf16.vlgmr.msra.gmra.mxu1 %v3390_v26  ;;  %v2400_v35 = vor.u32 %v2988_v30, %v2399_v29  ;;  %v2327_v38 = vld [vmem:[#allocation5 + $0x2a0] sm:$0xf]  ;;  %v2264_v46 = vor.u32 %v2954_v37, %v2263_v36 }
  0x44   :  { %973 = vmatpush.bf16.msrb.mxu0 %v2296_v53  ;;  %967 = vmatmul.bf16.vlgmr.msra.gmra.mxu3 %v3388_v25  ;;  %v2464_v39 = vor.u32 %v3004_v32, %v2463_v31  ;;  %v2970_v40 = vld [vmem:[#allocation5 + $0x2a4] sm:$0xf0]  ;;  %v2391_v41 = vld [vmem:[#allocation5 + $0x320] sm:$0xf]  ;;  %v116_v45 = vld [vmem:[#allocation2 + $0x8] sm:$0xff] }
  0x45   :  { %986 = vmatpush.bf16.msrb.mxu1 %v2360_v54  ;;  %v2986_v42 = vld [vmem:[#allocation5 + $0x324] sm:$0xf0]  ;;  %v2455_v43 = vld [vmem:[#allocation5 + $0x3a0] sm:$0xf]  ;;  %121 = vst [vmem:[#allocation1 + $0x20] ss:$4 sm:$0xff] %v116_v45  ;;  %v2328_v47 = vor.u32 %v2970_v40, %v2327_v38 }
  0x46   :  { %999 = vmatpush.bf16.msrb.mxu2 %v2424_v55  ;;  %v3002_v44 = vld [vmem:[#allocation5 + $0x3a4] sm:$0xf0]  ;;  %v2392_v48 = vor.u32 %v2986_v42, %v2391_v41  ;;  %v2255_v49 = vld [vmem:[#allocation5 + $0x210] sm:$0xf]  ;;  %v2952_v50 = vld [vmem:[#allocation5 + $0x214] sm:$0xf0] }
  0x47   :  { %1012 = vmatpush.bf16.msrb.mxu3 %v2488_v59  ;;  %v2319_v51 = vld [vmem:[#allocation5 + $0x290] sm:$0xf]  ;;  %v2456_v52 = vor.u32 %v3002_v44, %v2455_v43  ;;  %v2968_v53 = vld [vmem:[#allocation5 + $0x294] sm:$0xf0]  ;;  %v2247_v58 = vld [vmem:[#allocation5 + $0x200] sm:$0xf]  ;;  %v2256_v59 = vor.u32 %v2952_v50, %v2255_v49 }
  0x48   :  { %974 = vmatpush.bf16.msrb.mxu0 %v2288_v1  ;;  %v2383_v54 = vld [vmem:[#allocation5 + $0x310] sm:$0xf]  ;;  %v2984_v55 = vld [vmem:[#allocation5 + $0x314] sm:$0xf0]  ;;  %v2950_v60 = vld [vmem:[#allocation5 + $0x204] sm:$0xf0]  ;;  %v2320_v63 = vor.u32 %v2968_v53, %v2319_v51 }
  0x49   :  { %987 = vmatpush.bf16.msrb.mxu1 %v2352_v4  ;;  %v2447_v56 = vld [vmem:[#allocation5 + $0x390] sm:$0xf]  ;;  %v3000_v57 = vld [vmem:[#allocation5 + $0x394] sm:$0xf0]  ;;  %v2311_v61 = vld [vmem:[#allocation5 + $0x280] sm:$0xf]  ;;  %v2384_v0 = vor.u32 %v2984_v55, %v2383_v54  ;;  %v2248_v11 = vor.u32 %v2950_v60, %v2247_v58 }
  0x4a   :  { %1000 = vmatpush.bf16.msrb.mxu2 %v2416_v5  ;;  %v2966_v62 = vld [vmem:[#allocation5 + $0x284] sm:$0xf0]  ;;  %v2375_v1 = vld [vmem:[#allocation5 + $0x300] sm:$0xf]  ;;  %v2448_v4 = vor.u32 %v3000_v57, %v2447_v56  ;;  %v2899_v6 = vld [vmem:[#allocation5 + $0x74] sm:$0xf] }
  0x4b   :  { %1013 = vmatpush.bf16.msrb.mxu3 %v2480_v9  ;;  %v2982_v2 = vld [vmem:[#allocation5 + $0x304] sm:$0xf0]  ;;  %v2439_v3 = vld [vmem:[#allocation5 + $0x380] sm:$0xf]  ;;  %v2049_v7 = vld [vmem:[#allocation5 + $0x78] sm:$0xf0] }
  0x4c   :  { %975 = vmatpush.bf16.msrb.mxu0 %v2280_v15  ;;  %v2998_v5 = vld [vmem:[#allocation5 + $0x384] sm:$0xf0]  ;;  %v2915_v8 = vld [vmem:[#allocation5 + $0xf4] sm:$0xf]  ;;  %v2113_v9 = vld [vmem:[#allocation5 + $0xf8] sm:$0xf0]  ;;  %v2312_v15 = vor.u32 %v2966_v62, %v2311_v61  ;;  %v2052_v23 = vor.u32 %v2899_v6, %v2049_v7 }
  0x4d   :  { %988 = vmatpush.bf16.msrb.mxu1 %v2344_v16  ;;  %v2931_v10 = vld [vmem:[#allocation5 + $0x174] sm:$0xf]  ;;  %v2177_v12 = vld [vmem:[#allocation5 + $0x178] sm:$0xf0]  ;;  %v2376_v16 = vor.u32 %v2982_v2, %v2375_v1  ;;  %v2897_v20 = vld [vmem:[#allocation5 + $0x64] sm:$0xf]  ;;  %v2440_v22 = vor.u32 %v2998_v5, %v2439_v3  ;;  %v2116_v28 = vor.u32 %v2915_v8, %v2113_v9 }
  0x4e   :  { %1001 = vmatpush.bf16.msrb.mxu2 %v2408_v21  ;;  %v2947_v13 = vld [vmem:[#allocation5 + $0x1f4] sm:$0xf]  ;;  %v2241_v14 = vld [vmem:[#allocation5 + $0x1f8] sm:$0xf0]  ;;  %v2041_v21 = vld [vmem:[#allocation5 + $0x68] sm:$0xf0]  ;;  %v2180_v29 = vor.u32 %v2931_v10, %v2177_v12 }
  0x4f   :  { %1014 = vmatpush.bf16.msrb.mxu3 %v2472_v27  ;;  %v128_v19 = vld.sshfl [vmem:[#allocation1 + $0x30] sm:$0xff pattern:$0x73625140]  ;;  %v126_v24 = vld.sshfl [vmem:[#allocation1 + $0x20] sm:$0xff pattern:$0x73625140]  ;;  %v2244_v32 = vor.u32 %v2947_v13, %v2241_v14  ;;  %v2044_v41 = vor.u32 %v2897_v20, %v2041_v21 }
  0x50   :  { %976 = vmatpush.bf16.msrb.mxu0 %v2272_v33  ;;  %v129_v27 = vld.sshfl [vmem:[#allocation1 + $0x38] sm:$0xff pattern:$0x73625140]  ;;  %v127_v31 = vld.sshfl [vmem:[#allocation1 + $0x28] sm:$0xff pattern:$0x73625140]  ;;  %v3396_v33 = vpack.c.bf16 %v128_v19, %v128_v19  ;;  %v3398_v37 = vpack.c.bf16 %v126_v24, %v126_v24 }
  0x51   :  { %989 = vmatpush.bf16.msrb.mxu1 %v2336_v34  ;;  %v2913_v30 = vld [vmem:[#allocation5 + $0xe4] sm:$0xf]  ;;  %v2105_v34 = vld [vmem:[#allocation5 + $0xe8] sm:$0xf0]  ;;  %v3400_v38 = vpack.c.bf16 %v129_v27, %v129_v27  ;;  %v3402_v42 = vpack.c.bf16 %v127_v31, %v127_v31  ;;  %v2895_v45 = vld [vmem:[#allocation5 + $0x54] sm:$0xf] }
  0x52   :  { %1002 = vmatpush.bf16.msrb.mxu2 %v2400_v35  ;;  %v2929_v35 = vld [vmem:[#allocation5 + $0x164] sm:$0xf]  ;;  %v2169_v36 = vld [vmem:[#allocation5 + $0x168] sm:$0xf0]  ;;  %v2108_v43 = vor.u32 %v2913_v30, %v2105_v34  ;;  %v2097_v49 = vld [vmem:[#allocation5 + $0xd8] sm:$0xf0] }
  0x53   :  { %1015 = vmatpush.bf16.msrb.mxu3 %v2464_v39  ;;  %v2945_v39 = vld [vmem:[#allocation5 + $0x1e4] sm:$0xf]  ;;  %v2233_v40 = vld [vmem:[#allocation5 + $0x1e8] sm:$0xf0]  ;;  %v2172_v44 = vor.u32 %v2929_v35, %v2169_v36  ;;  %v2927_v50 = vld [vmem:[#allocation5 + $0x154] sm:$0xf] }
  0x54   :  { %977 = vmatpush.bf16.msrb.mxu0 %v2264_v46  ;;  %v2033_v46 = vld [vmem:[#allocation5 + $0x58] sm:$0xf0]  ;;  %v2893_v57 = vld [vmem:[#allocation5 + $0x44] sm:$0xf]  ;;  %v2025_v58 = vld [vmem:[#allocation5 + $0x48] sm:$0xf0] }
  0x55   :  { %990 = vmatpush.bf16.msrb.mxu1 %v2328_v47  ;;  %v2911_v47 = vld [vmem:[#allocation5 + $0xd4] sm:$0xf]  ;;  %v2161_v51 = vld [vmem:[#allocation5 + $0x158] sm:$0xf0]  ;;  %v2036_v54 = vor.u32 %v2895_v45, %v2033_v46  ;;  %v2089_v61 = vld [vmem:[#allocation5 + $0xc8] sm:$0xf0]  ;;  %v2028_v2 = vor.u32 %v2893_v57, %v2025_v58 }
  0x56   :  { %1003 = vmatpush.bf16.msrb.mxu2 %v2392_v48  ;;  %v2236_v48 = vor.u32 %v2945_v39, %v2233_v40  ;;  %v2225_v53 = vld [vmem:[#allocation5 + $0x1d8] sm:$0xf0]  ;;  %v2100_v55 = vor.u32 %v2911_v47, %v2097_v49  ;;  %v2164_v56 = vor.u32 %v2927_v50, %v2161_v51  ;;  %v2925_v62 = vld [vmem:[#allocation5 + $0x144] sm:$0xf]  ;;  %v2217_v1 = vld [vmem:[#allocation5 + $0x1c8] sm:$0xf0] }
  0x57   :  { %1016 = vmatpush.bf16.msrb.mxu3 %v2456_v52  ;;  %v2943_v52 = vld [vmem:[#allocation5 + $0x1d4] sm:$0xf]  ;;  %v2017_v6 = vld [vmem:[#allocation5 + $0x38] sm:$0xf0]  ;;  %v2889_v19 = vld [vmem:[#allocation5 + $0x24] sm:$0xf] }
  0x58   :  { %978 = vmatpush.bf16.msrb.mxu0 %v2256_v59  ;;  %v2909_v59 = vld [vmem:[#allocation5 + $0xc4] sm:$0xf]  ;;  %v2228_v60 = vor.u32 %v2943_v52, %v2225_v53  ;;  %v2891_v5 = vld [vmem:[#allocation5 + $0x34] sm:$0xf]  ;;  %v2081_v9 = vld [vmem:[#allocation5 + $0xb8] sm:$0xf0] }
  0x59   :  { %991 = vmatpush.bf16.msrb.mxu1 %v2320_v63  ;;  %v2153_v63 = vld [vmem:[#allocation5 + $0x148] sm:$0xf0]  ;;  %v2092_v3 = vor.u32 %v2909_v59, %v2089_v61  ;;  %v2907_v7 = vld [vmem:[#allocation5 + $0xb4] sm:$0xf]  ;;  %v2209_v13 = vld [vmem:[#allocation5 + $0x1b8] sm:$0xf0]  ;;  %v2020_v14 = vor.u32 %v2891_v5, %v2017_v6 }
  0x5a   :  { %1004 = vmatpush.bf16.msrb.mxu2 %v2384_v0  ;;  %v2941_v0 = vld [vmem:[#allocation5 + $0x1c4] sm:$0xf]  ;;  %v2923_v10 = vld [vmem:[#allocation5 + $0x134] sm:$0xf]  ;;  %v2009_v20 = vld [vmem:[#allocation5 + $0x28] sm:$0xf0] }
  0x5b   :  { %1017 = vmatpush.bf16.msrb.mxu3 %v2448_v4  ;;  %v2156_v4 = vor.u32 %v2925_v62, %v2153_v63  ;;  %v2220_v8 = vor.u32 %v2941_v0, %v2217_v1  ;;  %v2939_v12 = vld [vmem:[#allocation5 + $0x1b4] sm:$0xf]  ;;  %v2905_v21 = vld [vmem:[#allocation5 + $0xa4] sm:$0xf]  ;;  %v2137_v27 = vld [vmem:[#allocation5 + $0x128] sm:$0xf0]  ;;  %v2012_v30 = vor.u32 %v2889_v19, %v2009_v20 }
  0x5c   :  { %979 = vmatpush.bf16.msrb.mxu0 %v2248_v11  ;;  %v2145_v11 = vld [vmem:[#allocation5 + $0x138] sm:$0xf0]  ;;  %v2921_v24 = vld [vmem:[#allocation5 + $0x124] sm:$0xf]  ;;  %v2887_v34 = vld [vmem:[#allocation5 + $0x14] sm:$0xf] }
  0x5d   :  { %992 = vmatpush.bf16.msrb.mxu1 %v2312_v15  ;;  %v2084_v15 = vor.u32 %v2907_v7, %v2081_v9  ;;  %v2001_v35 = vld [vmem:[#allocation5 + $0x18] sm:$0xf0]  ;;  %v2903_v36 = vld [vmem:[#allocation5 + $0x94] sm:$0xf]  ;;  %v2885_v47 = vld [vmem:[#allocation5 + $0x4] sm:$0xf] }
  0x5e   :  { %1005 = vmatpush.bf16.msrb.mxu2 %v2376_v16  ;;  %v2148_v16 = vor.u32 %v2923_v10, %v2145_v11  ;;  %v2065_v40 = vld [vmem:[#allocation5 + $0x98] sm:$0xf0]  ;;  %v2004_v46 = vor.u32 %v2887_v34, %v2001_v35  ;;  %v2901_v51 = vld [vmem:[#allocation5 + $0x84] sm:$0xf]  ;;  %v2057_v52 = vld [vmem:[#allocation5 + $0x88] sm:$0xf0] }
  0x5f   :  { %1018 = vmatpush.bf16.msrb.mxu3 %v2440_v22  ;;  %980 = vmatmul.bf16.vlgmr.msrb.gmra.mxu0 %v3398_v37  ;;  %v2212_v22 = vor.u32 %v2939_v12, %v2209_v13  ;;  %v2193_v45 = vld [vmem:[#allocation5 + $0x198] sm:$0xf0]  ;;  %v2068_v49 = vor.u32 %v2903_v36, %v2065_v40  ;;  %v2917_v53 = vld [vmem:[#allocation5 + $0x104] sm:$0xf]  ;;  %v2185_v57 = vld [vmem:[#allocation5 + $0x188] sm:$0xf0]  ;;  %v2060_v1 = vor.u32 %v2901_v51, %v2057_v52 }
  0x60   :  { %1024 = vmatpush.bf16.msra.mxu0 %v2052_v23  ;;  %993 = vmatmul.bf16.vlgmr.msrb.gmra.mxu1 %v3402_v42  ;;  %v2073_v23 = vld [vmem:[#allocation5 + $0xa8] sm:$0xf0]  ;;  %v2963_v58 = vld [vmem:[#allocation5 + $0x274] sm:$0xf]  ;;  %v2305_v59 = vld [vmem:[#allocation5 + $0x278] sm:$0xf0] }
  0x61   :  { %1037 = vmatpush.bf16.msra.mxu1 %v2116_v28  ;;  %1006 = vmatmul.bf16.vlgmr.msrb.gmra.mxu2 %v3396_v33  ;;  %v2937_v28 = vld [vmem:[#allocation5 + $0x1a4] sm:$0xf]  ;;  %v2076_v31 = vor.u32 %v2905_v21, %v2073_v23  ;;  %v2369_v62 = vld [vmem:[#allocation5 + $0x2f8] sm:$0xf0]  ;;  %v2995_v63 = vld [vmem:[#allocation5 + $0x374] sm:$0xf]  ;;  %v2308_v6 = vor.u32 %v2963_v58, %v2305_v59 }
  0x62   :  { %1050 = vmatpush.bf16.msra.mxu2 %v2180_v29  ;;  %1019 = vmatmul.bf16.vlgmr.msrb.gmra.mxu3 %v3400_v38  ;;  %v2201_v29 = vld [vmem:[#allocation5 + $0x1a8] sm:$0xf0]  ;;  %v2433_v0 = vld [vmem:[#allocation5 + $0x378] sm:$0xf0]  ;;  %v2961_v7 = vld [vmem:[#allocation5 + $0x264] sm:$0xf] }
  0x63   :  { %1063 = vmatpush.bf16.msra.mxu3 %v2244_v32  ;;  %v2140_v32 = vor.u32 %v2921_v24, %v2137_v27  ;;  %v2204_v39 = vor.u32 %v2937_v28, %v2201_v29  ;;  %v2436_v9 = vor.u32 %v2995_v63, %v2433_v0  ;;  %v2297_v10 = vld [vmem:[#allocation5 + $0x268] sm:$0xf0]  ;;  %v2977_v11 = vld [vmem:[#allocation5 + $0x2e4] sm:$0xf]  ;;  %v2959_v23 = vld [vmem:[#allocation5 + $0x254] sm:$0xf] }
  0x64   :  { %1025 = vmatpush.bf16.msra.mxu0 %v2044_v41  ;;  %v2919_v41 = vld [vmem:[#allocation5 + $0x114] sm:$0xf]  ;;  %v2361_v13 = vld [vmem:[#allocation5 + $0x2e8] sm:$0xf0]  ;;  %v2300_v20 = vor.u32 %v2961_v7, %v2297_v10  ;;  %v2289_v24 = vld [vmem:[#allocation5 + $0x258] sm:$0xf0] }
  0x65   :  { %1038 = vmatpush.bf16.msra.mxu1 %v2108_v43  ;;  %v2129_v43 = vld [vmem:[#allocation5 + $0x118] sm:$0xf0]  ;;  %v2489_v19 = vld [vmem:[#allocation5 + $0x3e8] sm:$0xf0]  ;;  %v2364_v21 = vor.u32 %v2977_v11, %v2361_v13  ;;  %v2975_v27 = vld [vmem:[#allocation5 + $0x2d4] sm:$0xf]  ;;  %v2292_v35 = vor.u32 %v2959_v23, %v2289_v24 }
  0x66   :  { %1051 = vmatpush.bf16.msra.mxu2 %v2172_v44  ;;  %v2935_v44 = vld [vmem:[#allocation5 + $0x194] sm:$0xf]  ;;  %v2132_v50 = vor.u32 %v2919_v41, %v2129_v43  ;;  %v2353_v29 = vld [vmem:[#allocation5 + $0x2d8] sm:$0xf0]  ;;  %v2957_v40 = vld [vmem:[#allocation5 + $0x244] sm:$0xf] }
  0x67   :  { %1064 = vmatpush.bf16.msra.mxu3 %v2236_v48  ;;  %v1993_v48 = vld [vmem:[#allocation5 + $0x8] sm:$0xf0]  ;;  %v2481_v34 = vld [vmem:[#allocation5 + $0x3d8] sm:$0xf0]  ;;  %v2356_v36 = vor.u32 %v2975_v27, %v2353_v29  ;;  %v2971_v51 = vld [vmem:[#allocation5 + $0x2b4] sm:$0xf] }
  0x68   :  { %1026 = vmatpush.bf16.msra.mxu0 %v2036_v54  ;;  %v2196_v54 = vor.u32 %v2935_v44, %v2193_v45  ;;  %v1996_v61 = vor.u32 %v2885_v47, %v1993_v48  ;;  %v2281_v41 = vld [vmem:[#allocation5 + $0x248] sm:$0xf0]  ;;  %v2989_v45 = vld [vmem:[#allocation5 + $0x344] sm:$0xf]  ;;  %v2257_v10 = vld [vmem:[#allocation5 + $0x218] sm:$0xf0] }
  0x69   :  { %1039 = vmatpush.bf16.msra.mxu1 %v2100_v55  ;;  %v2121_v55 = vld [vmem:[#allocation5 + $0x108] sm:$0xf0]  ;;  %v3005_v47 = vld [vmem:[#allocation5 + $0x3c4] sm:$0xf]  ;;  %v2967_v11 = vld [vmem:[#allocation5 + $0x294] sm:$0xf] }
  0x6a   :  { %1052 = vmatpush.bf16.msra.mxu2 %v2164_v56  ;;  %v2933_v56 = vld [vmem:[#allocation5 + $0x184] sm:$0xf]  ;;  %v2345_v44 = vld [vmem:[#allocation5 + $0x2c8] sm:$0xf0]  ;;  %v2321_v13 = vld [vmem:[#allocation5 + $0x298] sm:$0xf0] }
  0x6b   :  { %1065 = vmatpush.bf16.msra.mxu3 %v2228_v60  ;;  %v2979_v60 = vld [vmem:[#allocation5 + $0x2f4] sm:$0xf]  ;;  %v2188_v5 = vor.u32 %v2933_v56, %v2185_v57  ;;  %v2465_v57 = vld [vmem:[#allocation5 + $0x3b8] sm:$0xf0]  ;;  %v2969_v63 = vld [vmem:[#allocation5 + $0x2a4] sm:$0xf] }
  0x6c   :  { %1027 = vmatpush.bf16.msra.mxu0 %v2028_v2  ;;  %v2124_v2 = vor.u32 %v2917_v53, %v2121_v55  ;;  %v2337_v53 = vld [vmem:[#allocation5 + $0x2b8] sm:$0xf0]  ;;  %v3003_v56 = vld [vmem:[#allocation5 + $0x3b4] sm:$0xf]  ;;  %v2249_v24 = vld [vmem:[#allocation5 + $0x208] sm:$0xf0] }
  0x6d   :  { %1040 = vmatpush.bf16.msra.mxu1 %v2092_v3  ;;  %v3011_v3 = vld [vmem:[#allocation5 + $0x3f4] sm:$0xf]  ;;  %v2401_v55 = vld [vmem:[#allocation5 + $0x338] sm:$0xf0]  ;;  %v2340_v59 = vor.u32 %v2971_v51, %v2337_v53  ;;  %v2468_v0 = vor.u32 %v3003_v56, %v2465_v57  ;;  %v2965_v27 = vld [vmem:[#allocation5 + $0x284] sm:$0xf] }
  0x6e   :  { %1053 = vmatpush.bf16.msra.mxu2 %v2156_v4  ;;  %v2497_v4 = vld [vmem:[#allocation5 + $0x3f8] sm:$0xf0]  ;;  %v3035_v51 = vld [vmem:[#allocation8 + $0xac] sm:$0xf0]  ;;  %v3029_v56 = vld [vmem:[#allocation8 + $0x84] sm:$0xf] }
  0x6f   :  { %1066 = vmatpush.bf16.msra.mxu3 %v2220_v8  ;;  %v2372_v8 = vor.u32 %v2979_v60, %v2369_v62  ;;  %v2500_v12 = vor.u32 %v3011_v3, %v2497_v4  ;;  %v2265_v62 = vld [vmem:[#allocation5 + $0x228] sm:$0xf0]  ;;  %v3001_v4 = vld [vmem:[#allocation5 + $0x3a4] sm:$0xf] }
  0x70   :  { %1028 = vmatpush.bf16.msra.mxu0 %v2020_v14  ;;  %v2993_v14 = vld [vmem:[#allocation5 + $0x364] sm:$0xf]  ;;  %v2393_v3 = vld [vmem:[#allocation5 + $0x328] sm:$0xf0] }
  0x71   :  { %1041 = vmatpush.bf16.msra.mxu1 %v2084_v15  ;;  %v2425_v15 = vld [vmem:[#allocation5 + $0x368] sm:$0xf0] }
  0x72   :  { %1054 = vmatpush.bf16.msra.mxu2 %v2148_v16  ;;  %v3009_v16 = vld [vmem:[#allocation5 + $0x3e4] sm:$0xf] }
  0x73   :  { %1067 = vmatpush.bf16.msra.mxu3 %v2212_v22  ;;  %v2428_v22 = vor.u32 %v2993_v14, %v2425_v15  ;;  %v2492_v28 = vor.u32 %v3009_v16, %v2489_v19  ;;  %v2983_v14 = vld [vmem:[#allocation5 + $0x314] sm:$0xf]  ;;  %v2385_v15 = vld [vmem:[#allocation5 + $0x318] sm:$0xf0] }
  0x74   :  { %1029 = vmatpush.bf16.msra.mxu0 %v2012_v30  ;;  %v2991_v30 = vld [vmem:[#allocation5 + $0x354] sm:$0xf]  ;;  %v2449_v19 = vld [vmem:[#allocation5 + $0x398] sm:$0xf0]  ;;  %v2388_v23 = vor.u32 %v2983_v14, %v2385_v15  ;;  %v3013_v15 = vld [vmem:[#allocation8 + $0x4] sm:$0xf] }
  0x75   :  { %1042 = vmatpush.bf16.msra.mxu1 %v2076_v31  ;;  %v2417_v31 = vld [vmem:[#allocation5 + $0x358] sm:$0xf0]  ;;  %v2999_v16 = vld [vmem:[#allocation5 + $0x394] sm:$0xf] }
  0x76   :  { %1055 = vmatpush.bf16.msra.mxu2 %v2140_v32  ;;  %v3007_v32 = vld [vmem:[#allocation5 + $0x3d4] sm:$0xf]  ;;  %v2452_v29 = vor.u32 %v2999_v16, %v2449_v19 }
  0x77   :  { %1068 = vmatpush.bf16.msra.mxu3 %v2204_v39  ;;  %v2420_v39 = vor.u32 %v2991_v30, %v2417_v31  ;;  %v2484_v43 = vor.u32 %v3007_v32, %v2481_v34  ;;  %v2981_v30 = vld [vmem:[#allocation5 + $0x304] sm:$0xf]  ;;  %v2377_v31 = vld [vmem:[#allocation5 + $0x308] sm:$0xf0]  ;;  %v3015_v14 = vld [vmem:[#allocation8 + $0xc] sm:$0xf0] }
  0x78   :  { %1030 = vmatpush.bf16.msra.mxu0 %v2004_v46  ;;  %v2409_v46 = vld [vmem:[#allocation5 + $0x348] sm:$0xf0]  ;;  %v2997_v32 = vld [vmem:[#allocation5 + $0x384] sm:$0xf] }
  0x79   :  { %1043 = vmatpush.bf16.msra.mxu1 %v2068_v49  ;;  %v2955_v49 = vld [vmem:[#allocation5 + $0x234] sm:$0xf]  ;;  %v2441_v34 = vld [vmem:[#allocation5 + $0x388] sm:$0xf0] }
  0x7a   :  { %1056 = vmatpush.bf16.msra.mxu2 %v2132_v50  ;;  %v2273_v50 = vld [vmem:[#allocation5 + $0x238] sm:$0xf0] }
  0x7b   :  { %1069 = vmatpush.bf16.msra.mxu3 %v2196_v54  ;;  %v2987_v54 = vld [vmem:[#allocation5 + $0x334] sm:$0xf]  ;;  %v2276_v58 = vor.u32 %v2955_v49, %v2273_v50  ;;  %v2583_v50 = vld [vmem:[#allocation8 + $0xa0] sm:$0xf] }
  0x7c   :  { %1031 = vmatpush.bf16.msra.mxu0 %v1996_v61  ;;  %v2404_v60 = vor.u32 %v2987_v54, %v2401_v55  ;;  %v2953_v61 = vld [vmem:[#allocation5 + $0x224] sm:$0xf]  ;;  %v2584_v53 = vor.u32 %v3035_v51, %v2583_v50  ;;  %v2575_v50 = vld [vmem:[#allocation8 + $0x88] sm:$0xf]  ;;  %v3032_v51 = vld [vmem:[#allocation8 + $0x94] sm:$0xf0] }
  0x7d   :  { %1044 = vmatpush.bf16.msra.mxu1 %v2060_v1  ;;  %v2329_v1 = vld [vmem:[#allocation5 + $0x2a8] sm:$0xf0]  ;;  %v2567_v55 = vld [vmem:[#allocation8 + $0x80] sm:$0xf] }
  0x7e   :  { %1057 = vmatpush.bf16.msra.mxu2 %v2124_v2  ;;  %v2985_v2 = vld [vmem:[#allocation5 + $0x324] sm:$0xf]  ;;  %v2332_v7 = vor.u32 %v2969_v63, %v2329_v1  ;;  %v3023_v1 = vld [vmem:[#allocation8 + $0x4c] sm:$0xf0] }
  0x7f   :  { %1070 = vmatpush.bf16.msra.mxu3 %v2188_v5  ;;  %1032 = vmatmul.bf16.vlgmr.msra.gmra.mxu0 %v3386_v18  ;;  %v2473_v18 = vld [vmem:[#allocation5 + $0x3c8] sm:$0xf0] }
  0x80   :  { %1076 = vmatpush.bf16.msrb.mxu0 %v2308_v6  ;;  %1045 = vmatmul.bf16.vlgmr.msra.gmra.mxu1 %v3390_v26  ;;  %v2412_v26 = vor.u32 %v2989_v45, %v2409_v46  ;;  %v2476_v52 = vor.u32 %v3005_v47, %v2473_v18  ;;  %v2457_v5 = vld [vmem:[#allocation5 + $0x3a8] sm:$0xf0]  ;;  %v2268_v6 = vor.u32 %v2953_v61, %v2265_v62  ;;  %v2599_v47 = vld [vmem:[#allocation8 + $0xc0] sm:$0xf]  ;;  %v3039_v18 = vld [vmem:[#allocation8 + $0xcc] sm:$0xf0] }
  0x81   :  { %1089 = vmatpush.bf16.msrb.mxu1 %v2372_v8  ;;  %1058 = vmatmul.bf16.vlgmr.msra.gmra.mxu2 %v3384_v17  ;;  %v2973_v17 = vld [vmem:[#allocation5 + $0x2c4] sm:$0xf]  ;;  %v2396_v8 = vor.u32 %v2985_v2, %v2393_v3  ;;  %v2553_v62 = vld [vmem:[#allocation8 + $0x70] sm:$0xf0] }
  0x82   :  { %1102 = vmatpush.bf16.msrb.mxu2 %v2436_v9  ;;  %1071 = vmatmul.bf16.vlgmr.msra.gmra.mxu3 %v3388_v25  ;;  %v2284_v25 = vor.u32 %v2957_v40, %v2281_v41  ;;  %v2348_v48 = vor.u32 %v2973_v17, %v2345_v44  ;;  %v2951_v9 = vld [vmem:[#allocation5 + $0x214] sm:$0xf]  ;;  %v3041_v40 = vld [vmem:[#allocation8 + $0xe4] sm:$0xf]  ;;  %v2444_v44 = vor.u32 %v2997_v32, %v2441_v34  ;;  %v2607_v32 = vld [vmem:[#allocation8 + $0xc8] sm:$0xf] }
  0x83   :  { %1115 = vmatpush.bf16.msrb.mxu3 %v2500_v12  ;;  %v2460_v12 = vor.u32 %v3001_v4, %v2457_v5  ;;  %v2617_v41 = vld [vmem:[#allocation8 + $0xf0] sm:$0xf0]  ;;  %v3021_v2 = vld [vmem:[#allocation8 + $0x44] sm:$0xf]  ;;  %v3040_v34 = vld [vmem:[#allocation8 + $0xd4] sm:$0xf0] }
  0x84   :  { %1077 = vmatpush.bf16.msrb.mxu0 %v2300_v20  ;;  %v2260_v20 = vor.u32 %v2951_v9, %v2257_v10  ;;  %v2620_v46 = vor.u32 %v3041_v40, %v2617_v41  ;;  %v2537_v4 = vld [vmem:[#allocation8 + $0x50] sm:$0xf0]  ;;  %v2609_v40 = vld [vmem:[#allocation8 + $0xd8] sm:$0xf0] }
  0x85   :  { %1090 = vmatpush.bf16.msrb.mxu1 %v2364_v21  ;;  %v2949_v21 = vld [vmem:[#allocation5 + $0x204] sm:$0xf]  ;;  %v2540_v5 = vor.u32 %v3021_v2, %v2537_v4  ;;  %v2521_v10 = vld [vmem:[#allocation8 + $0x30] sm:$0xf0]  ;;  %v2527_v4 = vld [vmem:[#allocation8 + $0x28] sm:$0xf] }
  0x86   :  { %1103 = vmatpush.bf16.msrb.mxu2 %v2428_v22  ;;  %v2324_v22 = vor.u32 %v2967_v11, %v2321_v13  ;;  %v2503_v13 = vld [vmem:[#allocation8] sm:$0xf] }
  0x87   :  { %1116 = vmatpush.bf16.msrb.mxu3 %v2492_v28  ;;  %v2313_v28 = vld [vmem:[#allocation5 + $0x288] sm:$0xf0]  ;;  %v2504_v19 = vor.u32 %v3015_v14, %v2503_v13 }
  0x88   :  { %1078 = vmatpush.bf16.msrb.mxu0 %v2292_v35  ;;  %v2615_v35 = vld [vmem:[#allocation8 + $0xe0] sm:$0xf]  ;;  %v2316_v17 = vor.u32 %v2965_v27, %v2313_v28  ;;  %v3042_v28 = vld [vmem:[#allocation8 + $0xec] sm:$0xf]  ;;  %v2511_v14 = vld [vmem:[#allocation8 + $0x8] sm:$0xf] }
  0x89   :  { %1091 = vmatpush.bf16.msrb.mxu1 %v2356_v36  ;;  %v3043_v36 = vld [vmem:[#allocation8 + $0xec] sm:$0xf0] }
  0x8a   :  { %1104 = vmatpush.bf16.msrb.mxu2 %v2420_v39  ;;  %v2252_v39 = vor.u32 %v2949_v21, %v2249_v24  ;;  %v2616_v45 = vor.u32 %v3043_v36, %v2615_v35  ;;  %v2623_v21 = vld [vmem:[#allocation8 + $0xe8] sm:$0xf]  ;;  %v3038_v35 = vld [vmem:[#allocation8 + $0xcc] sm:$0xf] }
  0x8b   :  { %1117 = vmatpush.bf16.msrb.mxu3 %v2484_v43  ;;  %v2380_v43 = vor.u32 %v2981_v30, %v2377_v31 }
  0x8c   :  { %1079 = vmatpush.bf16.msrb.mxu0 %v2284_v25  ;;  %v3037_v25 = vld [vmem:[#allocation8 + $0xc4] sm:$0xf] }
  0x8d   :  { %1092 = vmatpush.bf16.msrb.mxu1 %v2348_v48  ;;  %v2600_v48 = vor.u32 %v3039_v18, %v2599_v47  ;;  %v3034_v47 = vld [vmem:[#allocation8 + $0xac] sm:$0xf] }
  0x8e   :  { %1105 = vmatpush.bf16.msrb.mxu2 %v2412_v26  ;;  %v2601_v26 = vld [vmem:[#allocation8 + $0xd0] sm:$0xf0] }
  0x8f   :  { %1118 = vmatpush.bf16.msrb.mxu3 %v2476_v52  ;;  %v2604_v49 = vor.u32 %v3037_v25, %v2601_v26  ;;  %v3033_v52 = vld [vmem:[#allocation8 + $0xa4] sm:$0xf] }
  0x90   :  { %1080 = vmatpush.bf16.msrb.mxu0 %v2276_v58  ;;  %v2551_v58 = vld [vmem:[#allocation8 + $0x60] sm:$0xf] }
  0x91   :  { %1093 = vmatpush.bf16.msrb.mxu1 %v2340_v59  ;;  %v3027_v59 = vld [vmem:[#allocation8 + $0x6c] sm:$0xf0] }
  0x92   :  { %1106 = vmatpush.bf16.msrb.mxu2 %v2404_v60  ;;  %v3025_v60 = vld [vmem:[#allocation8 + $0x64] sm:$0xf]  ;;  %v2552_v61 = vor.u32 %v3027_v59, %v2551_v58  ;;  %v2561_v59 = vld [vmem:[#allocation8 + $0x78] sm:$0xf0] }
  0x93   :  { %1119 = vmatpush.bf16.msrb.mxu3 %v2468_v0  ;;  %v2556_v63 = vor.u32 %v3025_v60, %v2553_v62  ;;  %v2535_v0 = vld [vmem:[#allocation8 + $0x40] sm:$0xf]  ;;  %v2543_v60 = vld [vmem:[#allocation8 + $0x48] sm:$0xf] }
  0x94   :  { %1081 = vmatpush.bf16.msrb.mxu0 %v2268_v6  ;;  %v2536_v3 = vor.u32 %v3023_v1, %v2535_v0  ;;  %v2519_v6 = vld [vmem:[#allocation8 + $0x20] sm:$0xf]  ;;  %v2545_v0 = vld [vmem:[#allocation8 + $0x58] sm:$0xf0] }
  0x95   :  { %1094 = vmatpush.bf16.msrb.mxu1 %v2332_v7  ;;  %v3019_v7 = vld [vmem:[#allocation8 + $0x2c] sm:$0xf0] }
  0x96   :  { %1107 = vmatpush.bf16.msrb.mxu2 %v2396_v8  ;;  %v3017_v8 = vld [vmem:[#allocation8 + $0x24] sm:$0xf]  ;;  %v2520_v9 = vor.u32 %v3019_v7, %v2519_v6  ;;  %v3018_v6 = vld [vmem:[#allocation8 + $0x2c] sm:$0xf]  ;;  %v2529_v7 = vld [vmem:[#allocation8 + $0x38] sm:$0xf0] }
  0x97   :  { %1120 = vmatpush.bf16.msrb.mxu3 %v2460_v12  ;;  %v2524_v11 = vor.u32 %v3017_v8, %v2521_v10  ;;  %v3416_v12 = vld [vmem:[#allocation7] sm:$0x3]  ;;  %v2532_v13 = vor.u32 %v3018_v6, %v2529_v7 }
  0x98   :  { %1082 = vmatpush.bf16.msrb.mxu0 %v2260_v20  ;;  %v2505_v20 = vld [vmem:[#allocation8 + $0x10] sm:$0xf0]  ;;  %v276_v31 = vperm.slane %v3416_v12, 0 }
  0x99   :  { %1095 = vmatpush.bf16.msrb.mxu1 %v2324_v22  ;;  %v3044_v22 = vld [vmem:[#allocation8 + $0xf4] sm:$0xf0]  ;;  %v2508_v24 = vor.u32 %v3013_v15, %v2505_v20  ;;  %v2513_v20 = vld [vmem:[#allocation8 + $0x18] sm:$0xf0] }
  0x9a   :  { %1108 = vmatpush.bf16.msrb.mxu2 %v2388_v23  ;;  %v2624_v27 = vor.u32 %v3044_v22, %v2623_v21  ;;  %v3016_v15 = vld [vmem:[#allocation8 + $0x14] sm:$0xf0]  ;;  %v2743_v21 = vld [vmem:[#allocation8 + $0x1e0] sm:$0xf]  ;;  %v3075_v22 = vld [vmem:[#allocation8 + $0x1ec] sm:$0xf0] }
  0x9b   :  { %1121 = vmatpush.bf16.msrb.mxu3 %v2452_v29  ;;  %v2625_v29 = vld [vmem:[#allocation8 + $0xf8] sm:$0xf0] }
  0x9c   :  { %1083 = vmatpush.bf16.msrb.mxu0 %v2252_v39  ;;  %v2628_v30 = vor.u32 %v3042_v28, %v2625_v29  ;;  %v2608_v39 = vor.u32 %v3040_v34, %v2607_v32  ;;  %v2744_v28 = vor.u32 %v3075_v22, %v2743_v21  ;;  %v2745_v29 = vld [vmem:[#allocation8 + $0x1f0] sm:$0xf0] }
  0x9d   :  { %1096 = vmatpush.bf16.msrb.mxu1 %v2316_v17  ;;  %v2612_v17 = vor.u32 %v3038_v35, %v2609_v40  ;;  %v2727_v40 = vld [vmem:[#allocation8 + $0x1c0] sm:$0xf] }
  0x9e   :  { %1109 = vmatpush.bf16.msrb.mxu2 %v2380_v43 }
  0x9f   :  { %1122 = vmatpush.bf16.msrb.mxu3 %v2444_v44  ;;  %1084 = vmatmul.bf16.vlgmr.msrb.gmra.mxu0 %v3398_v37  ;;  %v2585_v37 = vld [vmem:[#allocation8 + $0xb0] sm:$0xf0] }
  0xa0   :  { %1532 = vmatpush.bf16.msra.mxu0 %v2616_v45  ;;  %1097 = vmatmul.bf16.vlgmr.msrb.gmra.mxu1 %v3402_v42  ;;  %v2588_v54 = vor.u32 %v3033_v52, %v2585_v37  ;;  %v3031_v42 = vld [vmem:[#allocation8 + $0x8c] sm:$0xf0]  ;;  %v2591_v45 = vld [vmem:[#allocation8 + $0xa8] sm:$0xf]  ;;  %v3030_v52 = vld [vmem:[#allocation8 + $0x8c] sm:$0xf]  ;;  %v2576_v37 = vor.u32 %v3032_v51, %v2575_v50 }
  0xa1   :  { %1110 = vmatmul.bf16.vlgmr.msrb.gmra.mxu2 %v3396_v33  ;;  %v2568_v33 = vor.u32 %v3031_v42, %v2567_v55  ;;  %1545 = vmatpush.bf16.msra.mxu1 %v2744_v28  ;;  %v2695_v51 = vld [vmem:[#allocation8 + $0x180] sm:$0xf] }
  0xa2   :  { %1558 = vmatpush.bf16.msra.mxu2 %v2620_v46  ;;  %1123 = vmatmul.bf16.vlgmr.msrb.gmra.mxu3 %v3400_v38  ;;  %v2569_v38 = vld [vmem:[#allocation8 + $0x90] sm:$0xf0]  ;;  %v3036_v46 = vld [vmem:[#allocation8 + $0xb4] sm:$0xf0] }
  0xa3   :  { %v2572_v57 = vor.u32 %v3029_v56, %v2569_v38  ;;  %v2592_v25 = vor.u32 %v3036_v46, %v2591_v45  ;;  %v3028_v38 = vld [vmem:[#allocation8 + $0x74] sm:$0xf0]  ;;  %v2729_v45 = vld [vmem:[#allocation8 + $0x1d0] sm:$0xf0] }
  0xa4   :  { %1533 = vmatpush.bf16.msra.mxu0 %v2600_v48  ;;  %v2593_v48 = vld [vmem:[#allocation8 + $0xb8] sm:$0xf0] }
  0xa5   :  { %v2596_v26 = vor.u32 %v3034_v47, %v2593_v48  ;;  %v2711_v47 = vld [vmem:[#allocation8 + $0x1a0] sm:$0xf] }
  0xa6   :  { %1559 = vmatpush.bf16.msra.mxu2 %v2604_v49 }
  0xa8   :  { %1534 = vmatpush.bf16.msra.mxu0 %v2584_v53 }
  0xaa   :  { %1560 = vmatpush.bf16.msra.mxu2 %v2588_v54  ;;  %v2577_v54 = vld [vmem:[#allocation8 + $0x98] sm:$0xf0] }
  0xab   :  { %v2580_v42 = vor.u32 %v3030_v52, %v2577_v54  ;;  %v3063_v52 = vld [vmem:[#allocation8 + $0x18c] sm:$0xf0]  ;;  %v2697_v54 = vld [vmem:[#allocation8 + $0x190] sm:$0xf0] }
  0xac   :  { %1535 = vmatpush.bf16.msra.mxu0 %v2568_v33  ;;  %v2559_v33 = vld [vmem:[#allocation8 + $0x68] sm:$0xf] }
  0xad   :  { %v2560_v58 = vor.u32 %v3028_v38, %v2559_v33  ;;  %v3059_v33 = vld [vmem:[#allocation8 + $0x16c] sm:$0xf0] }
  0xae   :  { %1561 = vmatpush.bf16.msra.mxu2 %v2572_v57  ;;  %v3026_v57 = vld [vmem:[#allocation8 + $0x6c] sm:$0xf] }
  0xaf   :  { %v2564_v62 = vor.u32 %v3026_v57, %v2561_v59  ;;  %v2681_v59 = vld [vmem:[#allocation8 + $0x170] sm:$0xf0] }
  0xb0   :  { %1536 = vmatpush.bf16.msra.mxu0 %v2552_v61  ;;  %v3024_v61 = vld [vmem:[#allocation8 + $0x54] sm:$0xf0] }
  0xb1   :  { %v2544_v2 = vor.u32 %v3024_v61, %v2543_v60 }
  0xb2   :  { %1562 = vmatpush.bf16.msra.mxu2 %v2556_v63  ;;  %v3022_v63 = vld [vmem:[#allocation8 + $0x4c] sm:$0xf] }
  0xb4   :  { %1537 = vmatpush.bf16.msra.mxu0 %v2536_v3  ;;  %v2548_v3 = vor.u32 %v3022_v63, %v2545_v0  ;;  %v2663_v0 = vld [vmem:[#allocation8 + $0x140] sm:$0xf] }
  0xb6   :  { %1563 = vmatpush.bf16.msra.mxu2 %v2540_v5  ;;  %v3020_v5 = vld [vmem:[#allocation8 + $0x34] sm:$0xf0] }
  0xb8   :  { %1538 = vmatpush.bf16.msra.mxu0 %v2520_v9 }
  0xba   :  { %1564 = vmatpush.bf16.msra.mxu2 %v2524_v11  ;;  %v2528_v11 = vor.u32 %v3020_v5, %v2527_v4  ;;  %v2665_v4 = vld [vmem:[#allocation8 + $0x150] sm:$0xf0] }
  0xbc   :  { %1539 = vmatpush.bf16.msra.mxu0 %v2504_v19  ;;  %v3014_v19 = vld [vmem:[#allocation8 + $0xc] sm:$0xf] }
  0xbd   :  { %v2516_v32 = vor.u32 %v3014_v19, %v2513_v20  ;;  %v3047_v19 = vld [vmem:[#allocation8 + $0x10c] sm:$0xf0]  ;;  %v3045_v20 = vld [vmem:[#allocation8 + $0x104] sm:$0xf] }
  0xbe   :  { %1565 = vmatpush.bf16.msra.mxu2 %v2508_v24 }
  0xbf   :  { %v929_v16 = vpop.f32.mrf.mxu0 }
  0xc0   :  { %v942_v23 = vpop.f32.mrf.mxu1  ;;  %1584 = vmatpush.bf16.msrb.mxu0 %v2624_v27  ;;  %v930_v43 = vadd.f32 %v929_v16, %v276_v31  ;;  %v2512_v27 = vor.u32 %v3016_v15, %v2511_v14 }
  0xc2   :  { %1610 = vmatpush.bf16.msrb.mxu2 %v2628_v30  ;;  %v943_v49 = vadd.f32 %v942_v23, %v930_v43  ;;  %v3073_v23 = vld [vmem:[#allocation8 + $0x1e4] sm:$0xf] }
  0xc3   :  { %v2748_v34 = vor.u32 %v3073_v23, %v2745_v29  ;;  %v2633_v23 = vld [vmem:[#allocation8 + $0x110] sm:$0xf0] }
  0xc4   :  { %v955_v36 = vpop.f32.mrf.mxu2  ;;  %1585 = vmatpush.bf16.msrb.mxu0 %v2608_v39  ;;  %v2636_v28 = vor.u32 %v3045_v20, %v2633_v23 }
  0xc5   :  { %v956_v56 = vadd.f32 %v955_v36, %v943_v49  ;;  %1571 = vmatpush.bf16.msra.mxu3 %v2748_v34 }
  0xc6   :  { %1611 = vmatpush.bf16.msrb.mxu2 %v2612_v17  ;;  %v3069_v17 = vld [vmem:[#allocation8 + $0x1c4] sm:$0xf] }
  0xc7   :  { %v968_v41 = vpop.f32.mrf.mxu3  ;;  %v931_v44 = vpop.f32.mrf.mxu0  ;;  %v2732_v46 = vor.u32 %v3069_v17, %v2729_v45  ;;  %v2737_v17 = vld [vmem:[#allocation8 + $0x1d8] sm:$0xf0] }
  0xc8   :  { %v944_v18 = vpop.f32.mrf.mxu1  ;;  %1586 = vmatpush.bf16.msrb.mxu0 %v2592_v25  ;;  %v969_v1 = vadd.f32 %v968_v41, %v956_v56  ;;  %v3071_v41 = vld [vmem:[#allocation8 + $0x1cc] sm:$0xf0]  ;;  %v3065_v25 = vld [vmem:[#allocation8 + $0x1a4] sm:$0xf]  ;;  %v2679_v56 = vld [vmem:[#allocation8 + $0x160] sm:$0xf] }
  0xc9   :  { %v2728_v44 = vor.u32 %v3071_v41, %v2727_v40  ;;  %v3067_v18 = vld [vmem:[#allocation8 + $0x1ac] sm:$0xf0]  ;;  %1572 = vmatpush.bf16.msra.mxu3 %v2732_v46  ;;  %v2680_v60 = vor.u32 %v3059_v33, %v2679_v56  ;;  %v3070_v40 = vld [vmem:[#allocation8 + $0x1cc] sm:$0xf]  ;;  %v3060_v56 = vld [vmem:[#allocation8 + $0x174] sm:$0xf0] }
  0xca   :  { %1612 = vmatpush.bf16.msrb.mxu2 %v2596_v26  ;;  %v2712_v48 = vor.u32 %v3067_v18, %v2711_v47  ;;  %v2713_v26 = vld [vmem:[#allocation8 + $0x1b0] sm:$0xf0]  ;;  %v2719_v47 = vld [vmem:[#allocation8 + $0x1a8] sm:$0xf]  ;;  %v3068_v18 = vld [vmem:[#allocation8 + $0x1b4] sm:$0xf0] }
  0xcb   :  { %1546 = vmatpush.bf16.msra.mxu1 %v2728_v44  ;;  %v2716_v50 = vor.u32 %v3065_v25, %v2713_v26  ;;  %v2740_v44 = vor.u32 %v3070_v40, %v2737_v17  ;;  %v3066_v25 = vld [vmem:[#allocation8 + $0x1ac] sm:$0xf]  ;;  %v2721_v26 = vld [vmem:[#allocation8 + $0x1b8] sm:$0xf0] }
  0xcc   :  { %v957_v53 = vpop.f32.mrf.mxu2  ;;  %1587 = vmatpush.bf16.msrb.mxu0 %v2576_v37  ;;  %v3061_v37 = vld [vmem:[#allocation8 + $0x184] sm:$0xf]  ;;  %v3058_v33 = vld [vmem:[#allocation8 + $0x16c] sm:$0xf]  ;;  %v3084_v40 = vld [vmem:[#allocation11 + $0x38] sm:$0xff] }
  0xcd   :  { %1573 = vmatpush.bf16.msra.mxu3 %v2716_v50  ;;  %v2724_v50 = vor.u32 %v3066_v25, %v2721_v26 }
  0xce   :  { %1613 = vmatpush.bf16.msrb.mxu2 %v2580_v42  ;;  %v2700_v42 = vor.u32 %v3061_v37, %v2697_v54  ;;  %v2705_v54 = vld [vmem:[#allocation8 + $0x198] sm:$0xf0] }
  0xcf   :  { %v970_v55 = vpop.f32.mrf.mxu3  ;;  %1547 = vmatpush.bf16.msra.mxu1 %v2712_v48  ;;  %v2720_v48 = vor.u32 %v3068_v18, %v2719_v47  ;;  %v3081_v18 = vld [vmem:[#allocation11 + $0x20] sm:$0xff] }
  0xd0   :  { %1588 = vmatpush.bf16.msrb.mxu0 %v2560_v58  ;;  %v2696_v55 = vor.u32 %v3063_v52, %v2695_v51  ;;  %v3057_v58 = vld [vmem:[#allocation8 + $0x164] sm:$0xf]  ;;  %v2703_v51 = vld [vmem:[#allocation8 + $0x188] sm:$0xf]  ;;  %v3064_v52 = vld [vmem:[#allocation8 + $0x194] sm:$0xf0] }
  0xd1   :  { %1574 = vmatpush.bf16.msra.mxu3 %v2700_v42  ;;  %v2704_v37 = vor.u32 %v3064_v52, %v2703_v51  ;;  %v2687_v42 = vld [vmem:[#allocation8 + $0x168] sm:$0xf]  ;;  %v3080_v52 = vld [vmem:[#allocation11 + $0x18] sm:$0xff] }
  0xd2   :  { %1614 = vmatpush.bf16.msrb.mxu2 %v2564_v62  ;;  %v2684_v62 = vor.u32 %v3057_v58, %v2681_v59  ;;  %v2671_v58 = vld [vmem:[#allocation8 + $0x148] sm:$0xf]  ;;  %v3056_v59 = vld [vmem:[#allocation8 + $0x154] sm:$0xf0] }
  0xd3   :  { %1548 = vmatpush.bf16.msra.mxu1 %v2696_v55 }
  0xd4   :  { %1589 = vmatpush.bf16.msrb.mxu0 %v2544_v2  ;;  %v3053_v2 = vld [vmem:[#allocation8 + $0x144] sm:$0xf] }
  0xd5   :  { %1575 = vmatpush.bf16.msra.mxu3 %v2684_v62  ;;  %v2668_v5 = vor.u32 %v3053_v2, %v2665_v4  ;;  %v3054_v62 = vld [vmem:[#allocation8 + $0x14c] sm:$0xf]  ;;  %v2655_v2 = vld [vmem:[#allocation8 + $0x128] sm:$0xf] }
  0xd6   :  { %1615 = vmatpush.bf16.msrb.mxu2 %v2548_v3  ;;  %v3050_v4 = vld [vmem:[#allocation8 + $0x12c] sm:$0xf] }
  0xd7   :  { %1549 = vmatpush.bf16.msra.mxu1 %v2680_v60 }
  0xd8   :  { %1590 = vmatpush.bf16.msrb.mxu0 %v2528_v11 }
  0xd9   :  { %1576 = vmatpush.bf16.msra.mxu3 %v2668_v5  ;;  %v2657_v5 = vld [vmem:[#allocation8 + $0x138] sm:$0xf0] }
  0xda   :  { %1616 = vmatpush.bf16.msrb.mxu2 %v2532_v13  ;;  %v2649_v13 = vld [vmem:[#allocation8 + $0x130] sm:$0xf0] }
  0xdc   :  { %v981_v8 = vpop.f32.mrf.mxu0  ;;  %1591 = vmatpush.bf16.msrb.mxu0 %v2512_v27  ;;  %v3076_v27 = vld [vmem:[#allocation8 + $0x1f4] sm:$0xf0] }
  0xdd   :  { %v982_v9 = vadd.f32 %v981_v8, %v969_v1  ;;  %v994_v10 = vpop.f32.mrf.mxu1  ;;  %v3055_v1 = vld [vmem:[#allocation8 + $0x14c] sm:$0xf0]  ;;  %v2647_v8 = vld [vmem:[#allocation8 + $0x120] sm:$0xf] }
  0xde   :  { %1617 = vmatpush.bf16.msrb.mxu2 %v2516_v32  ;;  %v2664_v3 = vor.u32 %v3055_v1, %v2663_v0  ;;  %v2672_v0 = vor.u32 %v3056_v59, %v2671_v58  ;;  %v3077_v58 = vld [vmem:[#allocation11] sm:$0xff] }
  0xdf   :  { %v995_v16 = vadd.f32 %v994_v10, %v982_v9  ;;  %v3051_v9 = vld [vmem:[#allocation8 + $0x12c] sm:$0xf0]  ;;  %v3049_v10 = vld [vmem:[#allocation8 + $0x124] sm:$0xf] }
  0xe0   :  { %1550 = vmatpush.bf16.msra.mxu1 %v2664_v3  ;;  %v2648_v11 = vor.u32 %v3051_v9, %v2647_v8  ;;  %v2652_v14 = vor.u32 %v3049_v10, %v2649_v13  ;;  %v3052_v3 = vld [vmem:[#allocation8 + $0x134] sm:$0xf0]  ;;  %v2639_v13 = vld [vmem:[#allocation8 + $0x108] sm:$0xf] }
  0xe1   :  { %v2656_v9 = vor.u32 %v3052_v3, %v2655_v2  ;;  %v3097_v59 = vld [vmem:[#allocation11 + $0xa0] sm:$0xff]  ;;  %v1202_v2 = vld [vmem:[#allocation10] sm:$0xf] }
  0xe2   :  { %1577 = vmatpush.bf16.msra.mxu3 %v2652_v14  ;;  %v3048_v14 = vld [vmem:[#allocation8 + $0x114] sm:$0xf0]  ;;  %v3104_v3 = vld [vmem:[#allocation11 + $0xd8] sm:$0xff] }
  0xe4   :  { %v1007_v24 = vpop.f32.mrf.mxu2  ;;  %v983_v36 = vpop.f32.mrf.mxu0  ;;  %1551 = vmatpush.bf16.msra.mxu1 %v2648_v11  ;;  %v2660_v11 = vor.u32 %v3050_v4, %v2657_v5  ;;  %v3094_v4 = vld [vmem:[#allocation11 + $0x88] sm:$0xff]  ;;  %v1204_v5 = vperm.slane %v1202_v2, 0 }
  0xe5   :  { %v1008_v30 = vadd.f32 %v1007_v24, %v995_v16  ;;  %v1020_v31 = vpop.f32.mrf.mxu3  ;;  %v996_v39 = vpop.f32.mrf.mxu1  ;;  %v2631_v16 = vld [vmem:[#allocation8 + $0x100] sm:$0xf]  ;;  %v2751_v24 = vld [vmem:[#allocation8 + $0x1e8] sm:$0xf] }
  0xe6   :  { %v2632_v22 = vor.u32 %v3047_v19, %v2631_v16  ;;  %v2752_v29 = vor.u32 %v3076_v27, %v2751_v24  ;;  %1578 = vmatpush.bf16.msra.mxu3 %v2636_v28  ;;  %v2735_v36 = vld [vmem:[#allocation8 + $0x1c8] sm:$0xf]  ;;  %v3072_v39 = vld [vmem:[#allocation8 + $0x1d4] sm:$0xf0]  ;;  %v2641_v16 = vld [vmem:[#allocation8 + $0x118] sm:$0xf0]  ;;  %v2640_v19 = vor.u32 %v3048_v14, %v2639_v13 }
  0xe7   :  { %v1021_v35 = vadd.f32 %v1020_v31, %v1008_v30  ;;  %v3074_v30 = vld [vmem:[#allocation8 + $0x1ec] sm:$0xf]  ;;  %v2753_v31 = vld [vmem:[#allocation8 + $0x1f8] sm:$0xf0]  ;;  %v2736_v41 = vor.u32 %v3072_v39, %v2735_v36 }
  0xe8   :  { %1552 = vmatpush.bf16.msra.mxu1 %v2632_v22  ;;  %v2756_v34 = vor.u32 %v3074_v30, %v2753_v31 }
  0xe9   :  { %v1128_v43 = vmul.f32 0.5, %v1021_v35 }
  0xea   :  { %1623 = vmatpush.bf16.msrb.mxu3 %v2756_v34 }
  0xeb   :  { %3123 = vtanh.f32 %v1128_v43  ;;  %v277_v43 = vperm.slane %v3416_v12, 1 }
  0xec   :  { %v1009_v49 = vpop.f32.mrf.mxu2  ;;  %1597 = vmatpush.bf16.msrb.mxu1 %v2752_v29 }
  0xed   :  { %v1022_v53 = vpop.f32.mrf.mxu3 }
  0xee   :  { %1624 = vmatpush.bf16.msrb.mxu3 %v2740_v44  ;;  %v3062_v53 = vld [vmem:[#allocation8 + $0x18c] sm:$0xf]  ;;  %v3091_v44 = vld [vmem:[#allocation11 + $0x70] sm:$0xff] }
  0xef   :  { %v2708_v55 = vor.u32 %v3062_v53, %v2705_v54  ;;  %v3100_v53 = vld [vmem:[#allocation11 + $0xb8] sm:$0xff]  ;;  %v3079_v54 = vld [vmem:[#allocation11 + $0x10] sm:$0xff] }
  0xf0   :  { %1598 = vmatpush.bf16.msrb.mxu1 %v2736_v41  ;;  %v3092_v41 = vld [vmem:[#allocation11 + $0x78] sm:$0xff] }
  0xf1   :  { %v3124_v38 = vpop.eup %3123 }
  0xf2   :  { %v1132_v57 = vmul.f32 0.5, %v3124_v38  ;;  %1625 = vmatpush.bf16.msrb.mxu3 %v2724_v50  ;;  %v2688_v38 = vor.u32 %v3060_v56, %v2687_v42  ;;  %v3090_v50 = vld [vmem:[#allocation11 + $0x68] sm:$0xff]  ;;  %v3108_v42 = vld [vmem:[#allocation11 + $0xf8] sm:$0xff] }
  0xf3   :  { %v3078_v56 = vld [vmem:[#allocation11 + $0x8] sm:$0xff] }
  0xf4   :  { %v1134_v61 = vadd.f32 0.5, %v1132_v57  ;;  %1599 = vmatpush.bf16.msrb.mxu1 %v2720_v48  ;;  %v2689_v57 = vld [vmem:[#allocation8 + $0x178] sm:$0xf0] }
  0xf6   :  { %v1136_v63 = vpack.c.bf16 %v1134_v61, %v1134_v61  ;;  %1626 = vmatpush.bf16.msrb.mxu3 %v2708_v55  ;;  %v2692_v61 = vor.u32 %v3058_v33, %v2689_v57  ;;  %v3088_v55 = vld [vmem:[#allocation11 + $0x58] sm:$0xff]  ;;  %v3098_v33 = vld [vmem:[#allocation11 + $0xa8] sm:$0xff]  ;;  %v3107_v57 = vld [vmem:[#allocation11 + $0xf0] sm:$0xff] }
  0xf8   :  { %1540 = vmatmul.bf16.vlgmr.msra.gmra.mxu0 %v1136_v63  ;;  %1566 = vmatmul.bf16.vlgmr.msra.gmra.mxu2 %v1136_v63 }
  0xf9   :  { %1600 = vmatpush.bf16.msrb.mxu1 %v2704_v37  ;;  %1916 = vmatpush.bf16.msra.mxu0 %v3084_v40  ;;  %v3089_v37 = vld [vmem:[#allocation11 + $0x60] sm:$0xff] }
  0xfa   :  { %1627 = vmatpush.bf16.msrb.mxu3 %v2692_v61  ;;  %1942 = vmatpush.bf16.msra.mxu2 %v3100_v53  ;;  %v3106_v61 = vld [vmem:[#allocation11 + $0xe8] sm:$0xff] }
  0xfc   :  { %v1033_v6 = vpop.f32.mrf.mxu0 }
  0xfd   :  { %v1046_v7 = vpop.f32.mrf.mxu1  ;;  %v1034_v49 = vadd.f32 %v1033_v6, %v277_v43  ;;  %1601 = vmatpush.bf16.msrb.mxu1 %v2688_v38  ;;  %v3083_v43 = vld [vmem:[#allocation11 + $0x30] sm:$0xff] }
  0xfe   :  { %1917 = vmatpush.bf16.msra.mxu0 %v3083_v43  ;;  %v3087_v38 = vld [vmem:[#allocation11 + $0x50] sm:$0xff] }
  0xff   :  { %v1047_v12 = vadd.f32 %v1046_v7, %v1034_v49 }
 0x101   :  { %1602 = vmatpush.bf16.msrb.mxu1 %v2672_v0  ;;  %v3105_v0 = vld [vmem:[#allocation11 + $0xe0] sm:$0xff] }
 0x104   :  { %v1059_v15 = vpop.f32.mrf.mxu2  ;;  %v1035_v32 = vpop.f32.mrf.mxu0 }
 0x105   :  { %v3419_v21 = vpop.f32.mrf.mxu3  ;;  %v1048_v35 = vpop.f32.mrf.mxu1  ;;  %v1060_v60 = vadd.f32 %v1059_v15, %v1047_v12  ;;  %v3046_v15 = vld [vmem:[#allocation8 + $0x10c] sm:$0xf]  ;;  %1603 = vmatpush.bf16.msrb.mxu1 %v2656_v9  ;;  %v3099_v12 = vld [vmem:[#allocation11 + $0xb0] sm:$0xff] }
 0x106   :  { %v2644_v22 = vor.u32 %v3046_v15, %v2641_v16  ;;  %1943 = vmatpush.bf16.msra.mxu2 %v3099_v12  ;;  %v3101_v15 = vld [vmem:[#allocation11 + $0xc0] sm:$0xff] }
 0x107   :  { %v1073_v6 = vadd.f32 %v3419_v21, %v1060_v60  ;;  %v3086_v60 = vld [vmem:[#allocation11 + $0x48] sm:$0xff] }
 0x108   :  { %1592 = vmatmul.bf16.vlgmr.msrb.gmra.mxu0 %v1136_v63  ;;  %1618 = vmatmul.bf16.vlgmr.msrb.gmra.mxu2 %v1136_v63  ;;  %v2673_v63 = vld [vmem:[#allocation8 + $0x158] sm:$0xf0] }
 0x109   :  { %v2676_v1 = vor.u32 %v3054_v62, %v2673_v63  ;;  %1604 = vmatpush.bf16.msrb.mxu1 %v2640_v19  ;;  %v3096_v62 = vld [vmem:[#allocation11 + $0x98] sm:$0xff]  ;;  %v3085_v63 = vld [vmem:[#allocation11 + $0x40] sm:$0xff] }
 0x10a   :  { %1944 = vmatpush.bf16.msra.mxu2 %v3098_v33 }
 0x10b   :  { %1628 = vmatpush.bf16.msrb.mxu3 %v2676_v1  ;;  %v3095_v1 = vld [vmem:[#allocation11 + $0x90] sm:$0xff] }
 0x10c   :  { %v1061_v45 = vpop.f32.mrf.mxu2 }
 0x10d   :  { %v1074_v46 = vpop.f32.mrf.mxu3  ;;  %v3082_v45 = vld [vmem:[#allocation11 + $0x28] sm:$0xff] }
 0x10e   :  { %1918 = vmatpush.bf16.msra.mxu0 %v3082_v45  ;;  %1945 = vmatpush.bf16.msra.mxu2 %v3097_v59 }
 0x10f   :  { %1629 = vmatpush.bf16.msrb.mxu3 %v2660_v11  ;;  %v1205_v11 = vperm.slane %v1202_v2, 1 }
 0x112   :  { %1919 = vmatpush.bf16.msra.mxu0 %v3081_v18  ;;  %1946 = vmatpush.bf16.msra.mxu2 %v3096_v62 }
 0x113   :  { %1630 = vmatpush.bf16.msrb.mxu3 %v2644_v22 }
 0x116   :  { %1920 = vmatpush.bf16.msra.mxu0 %v3080_v52  ;;  %1947 = vmatpush.bf16.msra.mxu2 %v3095_v1 }
 0x11a   :  { %1921 = vmatpush.bf16.msra.mxu0 %v3079_v54  ;;  %1948 = vmatpush.bf16.msra.mxu2 %v3094_v4 }
 0x11c   :  { %v1085_v7 = vpop.f32.mrf.mxu0 }
 0x11d   :  { %v1098_v8 = vpop.f32.mrf.mxu1  ;;  %v1086_v10 = vadd.f32 %v1085_v7, %v1073_v6  ;;  %v3103_v6 = vld [vmem:[#allocation11 + $0xd0] sm:$0xff]  ;;  %v3093_v7 = vld [vmem:[#allocation11 + $0x80] sm:$0xff] }
 0x11e   :  { %1922 = vmatpush.bf16.msra.mxu0 %v3078_v56  ;;  %1949 = vmatpush.bf16.msra.mxu2 %v3093_v7 }
 0x11f   :  { %v1099_v20 = vadd.f32 %v1098_v8, %v1086_v10  ;;  %v3102_v10 = vld [vmem:[#allocation11 + $0xc8] sm:$0xff] }
 0x122   :  { %1923 = vmatpush.bf16.msra.mxu0 %v3077_v58 }
 0x124   :  { %v1111_v23 = vpop.f32.mrf.mxu2  ;;  %v1087_v21 = vpop.f32.mrf.mxu0 }
 0x125   :  { %v1112_v24 = vadd.f32 %v1111_v23, %v1099_v20  ;;  %v1124_v27 = vpop.f32.mrf.mxu3  ;;  %v1100_v28 = vpop.f32.mrf.mxu1 }
 0x127   :  { %v1125_v29 = vadd.f32 %v1124_v27, %v1112_v24  ;;  %v1206_v27 = vperm.slane %v1202_v2, 2 }
 0x129   :  { %v1129_v30 = vmul.f32 0.5, %v1125_v29 }
 0x12b   :  { %3125 = vtanh.f32 %v1129_v30 }
 0x12c   :  { %v1113_v31 = vpop.f32.mrf.mxu2 }
 0x12d   :  { %v1126_v32 = vpop.f32.mrf.mxu3 }
 0x131   :  { %v3126_v34 = vpop.eup %3125 }
 0x132   :  { %v1133_v35 = vmul.f32 0.5, %v3126_v34 }
 0x134   :  { %v1135_v36 = vadd.f32 0.5, %v1133_v35  ;;  %v1207_v35 = vperm.slane %v1202_v2, 3 }
 0x136   :  { %v1137_v39 = vpack.c.bf16 %v1135_v36, %v1135_v36 }
 0x138   :  { %1553 = vmatmul.bf16.vlgmr.msra.gmra.mxu1 %v1137_v39  ;;  %1579 = vmatmul.bf16.vlgmr.msra.gmra.mxu3 %v1137_v39 }
 0x139   :  { %1929 = vmatpush.bf16.msra.mxu1 %v3092_v41  ;;  %1955 = vmatpush.bf16.msra.mxu3 %v3108_v42  ;;  %v3122_v42 = vld [vmem:[%s3447_s6] ss:$0 sm:$0xff] }
 0x13d   :  { %1930 = vmatpush.bf16.msra.mxu1 %v3091_v44  ;;  %1956 = vmatpush.bf16.msra.mxu3 %v3107_v57 }
 0x141   :  { %1931 = vmatpush.bf16.msra.mxu1 %v3090_v50  ;;  %1957 = vmatpush.bf16.msra.mxu3 %v3106_v61 }
 0x145   :  { %1932 = vmatpush.bf16.msra.mxu1 %v3089_v37  ;;  %1958 = vmatpush.bf16.msra.mxu3 %v3105_v0 }
 0x148   :  { %1605 = vmatmul.bf16.vlgmr.msrb.gmra.mxu1 %v1137_v39  ;;  %1631 = vmatmul.bf16.vlgmr.msrb.gmra.mxu3 %v1137_v39 }
 0x149   :  { %1933 = vmatpush.bf16.msra.mxu1 %v3088_v55  ;;  %1959 = vmatpush.bf16.msra.mxu3 %v3104_v3 }
 0x14d   :  { %1934 = vmatpush.bf16.msra.mxu1 %v3087_v38  ;;  %1960 = vmatpush.bf16.msra.mxu3 %v3103_v6 }
 0x151   :  { %1935 = vmatpush.bf16.msra.mxu1 %v3086_v60  ;;  %1961 = vmatpush.bf16.msra.mxu3 %v3102_v10 }
 0x155   :  { %1936 = vmatpush.bf16.msra.mxu1 %v3085_v63  ;;  %1962 = vmatpush.bf16.msra.mxu3 %v3101_v15 }
 0x175   :  { %v3423_v17 = vpop.f32.mrf.mxu0 }
 0x176   :  { %v1542_v8 = vadd.f32 %v3423_v17, %v1204_v5 }
 0x17b   :  { %v3425_v46 = vpop.f32.mrf.mxu2 }
 0x17c   :  { %v1568_v16 = vadd.f32 %v3425_v46, %v1205_v11 }
 0x17d   :  { %v1543_v47 = vpop.f32.mrf.mxu0 }
 0x183   :  { %v1569_v25 = vpop.f32.mrf.mxu2 }
 0x185   :  { %v3427_v48 = vpop.f32.mrf.mxu0 }
 0x186   :  { %v1594_v30 = vadd.f32 %v3427_v48, %v1206_v27 }
 0x18b   :  { %v3429_v26 = vpop.f32.mrf.mxu2 }
 0x18c   :  { %v1620_v17 = vadd.f32 %v3429_v26, %v1207_v35 }
 0x18d   :  { %v1595_v49 = vpop.f32.mrf.mxu0 }
 0x193   :  { %v1621_v51 = vpop.f32.mrf.mxu2 }
 0x1b5   :  { %v1554_v9 = vpop.f32.mrf.mxu1 }
 0x1b6   :  { %v1555_v13 = vadd.f32 %v1554_v9, %v1542_v8 }
 0x1b8   :  { %v1636_v14 = vmul.f32 0.5, %v1555_v13 }
 0x1ba   :  { %3127 = vtanh.f32 %v1636_v14 }
 0x1bb   :  { %v1580_v19 = vpop.f32.mrf.mxu3 }
 0x1bc   :  { %v1581_v20 = vadd.f32 %v1580_v19, %v1568_v16 }
 0x1bd   :  { %v1556_v22 = vpop.f32.mrf.mxu1 }
 0x1be   :  { %v1637_v23 = vmul.f32 0.5, %v1581_v20 }
 0x1c0   :  { %v3128_v24 = vpop.eup %3127  ;;  %3129 = vtanh.f32 %v1637_v23 }
 0x1c1   :  { %v1644_v21 = vmul.f32 0.5, %v3128_v24 }
 0x1c3   :  { %v1648_v28 = vadd.f32 0.5, %v1644_v21  ;;  %v1582_v29 = vpop.f32.mrf.mxu3 }
 0x1c5   :  { %v1652_v31 = vpack.c.bf16 %v1648_v28, %v1648_v28  ;;  %v1606_v32 = vpop.f32.mrf.mxu1 }
 0x1c6   :  { %v3130_v34 = vpop.eup %3129  ;;  %v1607_v36 = vadd.f32 %v1606_v32, %v1594_v30 }
 0x1c7   :  { %v1645_v39 = vmul.f32 0.5, %v3130_v34  ;;  %1924 = vmatmul.bf16.vlgmr.msra.gmra.mxu0 %v1652_v31 }
 0x1c8   :  { %v1638_v40 = vmul.f32 0.5, %v1607_v36 }
 0x1c9   :  { %v1649_v41 = vadd.f32 0.5, %v1645_v39 }
 0x1ca   :  { %3131 = vtanh.f32 %v1638_v40 }
 0x1cb   :  { %v1653_v43 = vpack.c.bf16 %v1649_v41, %v1649_v41  ;;  %v1632_v44 = vpop.f32.mrf.mxu3 }
 0x1cc   :  { %v1633_v45 = vadd.f32 %v1632_v44, %v1620_v17 }
 0x1cd   :  { %v1608_v46 = vpop.f32.mrf.mxu1  ;;  %1937 = vmatmul.bf16.vlgmr.msra.gmra.mxu1 %v1653_v43 }
 0x1ce   :  { %v1639_v47 = vmul.f32 0.5, %v1633_v45 }
 0x1d0   :  { %v3132_v18 = vpop.eup %3131  ;;  %3133 = vtanh.f32 %v1639_v47 }
 0x1d1   :  { %v1646_v25 = vmul.f32 0.5, %v3132_v18 }
 0x1d3   :  { %v1650_v48 = vadd.f32 0.5, %v1646_v25  ;;  %v1634_v49 = vpop.f32.mrf.mxu3 }
 0x1d5   :  { %v1654_v50 = vpack.c.bf16 %v1650_v48, %v1650_v48 }
 0x1d6   :  { %v3134_v51 = vpop.eup %3133 }
 0x1d7   :  { %v1647_v52 = vmul.f32 0.5, %v3134_v51  ;;  %1950 = vmatmul.bf16.vlgmr.msra.gmra.mxu2 %v1654_v50 }
 0x1d9   :  { %v1651_v53 = vadd.f32 0.5, %v1647_v52 }
 0x1db   :  { %v1655_v37 = vpack.c.bf16 %v1651_v53, %v1651_v53 }
 0x1dd   :  { %1963 = vmatmul.bf16.vlgmr.msra.gmra.mxu3 %v1655_v37 }
 0x244   :  { %v1925_v26 = vpop.f32.mrf.mxu0 }
 0x245   :  { %v1926_v33 = vadd.f32 %v3122_v42, %v1925_v26 }
 0x24a   :  { %v1938_v54 = vpop.f32.mrf.mxu1 }
 0x24b   :  { %v1939_v38 = vadd.f32 %v1938_v54, %v1926_v33 }
 0x24c   :  { %v1927_v12 = vpop.f32.mrf.mxu0 }
 0x252   :  { %v1940_v55 = vpop.f32.mrf.mxu1 }
 0x25a   :  { %v1951_v56 = vpop.f32.mrf.mxu2 }
 0x25b   :  { %v1952_v57 = vadd.f32 %v1951_v56, %v1939_v38 }
 0x260   :  { %v1964_v58 = vpop.f32.mrf.mxu3 }
 0x261   :  { %v1965_v59 = vadd.f32 %v1964_v58, %v1952_v57 }
 0x262   :  { %v1953_v60 = vpop.f32.mrf.mxu2 }
 0x263   :  { %1968 = vst [vmem:[#allocation13] sm:$0x3] %v1965_v59 }
 0x264   :  { %1979 = dma.vmem_to_hbm [thread:$0]  %s1975_s11, 32, %s1977_s14, [#allocation4]  }
 0x268   :  { %v1966_v61 = vpop.f32.mrf.mxu3 }
 0x269   :  { %3311 = dma.done.wait [#allocation4], 32  }
 0x26a   :  { %3312 = vsyncadd [#allocation4], 4294967264 }
 0x26b   :  { %1984 = vsyncpa [#allocation3], 1 }
 0x26c   :  { %1985 = vsyncpa [#allocation6], 1 }
 0x26d   :  { %1986 = vsyncpa [#allocation9], 1 }
 0x26e   :  { %1987 = vsyncpa [#allocation12], 1 }
 0x26f   :  { %1988 = vsyncpa [#allocation4], 1 }

</bundles_post_ra>
